<compile_context>
chip_gen: v5e
topology: v5e:2x2
jax: 0.10.0
libtpu: 0.0.40
codegen_flags: <defaults>
</compile_context>

<pallas_src>
import functools
import math

import jax
import jax.numpy as jnp
from jax import lax
from jax.experimental import pallas as pl
from jax.experimental.pallas import tpu as pltpu


def _perceiver_attention_kernel(x_ref, lat_ref, g1_ref, b1_ref, g2_ref, b2_ref,
                                wq_ref, wkv_ref, wo_ref, o_ref,
                                *, heads, dim_head, eps):
    # Per grid step (one batch element):
    #   x_ref   : (n1, D)        image features
    #   lat_ref : (n2, D)        latents
    #   g*/b*   : (1, D)         LayerNorm weight / bias
    #   wq_ref  : (D, inner)     inner = heads * dim_head
    #   wkv_ref : (D, 2*inner)
    #   wo_ref  : (inner, D)
    #   o_ref   : (n2, D)
    f32 = jnp.float32
    x = x_ref[...].astype(f32)
    lat = lat_ref[...].astype(f32)

    def layernorm(v, g, b):
        mu = jnp.mean(v, axis=-1, keepdims=True)
        c = v - mu
        var = jnp.mean(c * c, axis=-1, keepdims=True)
        return c * lax.rsqrt(var + eps) * g + b

    xn = layernorm(x, g1_ref[...].astype(f32), b1_ref[...].astype(f32))
    latn = layernorm(lat, g2_ref[...].astype(f32), b2_ref[...].astype(f32))

    inner = heads * dim_head
    scale = dim_head ** -0.25  # applied to both q and k (matches the reference)

    # Full-lane projections on the MXU with f32 accumulation.
    q = jnp.dot(latn, wq_ref[...].astype(f32),
                preferred_element_type=f32) * scale               # (n2, inner)
    kv_in = jnp.concatenate([xn, latn], axis=0)                   # (L, D) sublane concat
    kv = jnp.dot(kv_in, wkv_ref[...].astype(f32),
                 preferred_element_type=f32)                      # (L, 2*inner)
    k = kv[:, :inner] * scale                                     # (L, inner)
    v = kv[:, inner:]                                             # (L, inner)

    wo = wo_ref[...].astype(f32)

    # Accumulate the output projection per head:
    #   concat_h(out_h) @ Wout == sum_h out_h @ Wout[h*dh:(h+1)*dh, :]
    acc = jnp.zeros_like(latn)                                    # (n2, D)
    for h in range(heads):                                        # static unroll
        lo = h * dim_head
        hi = lo + dim_head
        qh = q[:, lo:hi]                                          # (n2, dh)
        kh = k[:, lo:hi]                                          # (L, dh)
        vh = v[:, lo:hi]                                          # (L, dh)
        # scores = qh @ kh^T without an explicit transpose.
        s = lax.dot_general(qh, kh, (((1,), (1,)), ((), ())),
                            preferred_element_type=f32)           # (n2, L)
        m = jnp.max(s, axis=-1, keepdims=True)
        p = jnp.exp(s - m)
        attn = p * pl.reciprocal(jnp.sum(p, axis=-1, keepdims=True))  # f32 softmax
        oh = jnp.dot(attn, vh, preferred_element_type=f32)        # (n2, dh)
        acc = acc + jnp.dot(oh, wo[lo:hi, :], preferred_element_type=f32)

    o_ref[...] = acc.astype(o_ref.dtype)


def perceiver_attention(x, latents, ln1_w, ln1_b, ln2_w, ln2_b, wq, wkv, wo, *,
                        heads, dim_head, eps=1e-5):
    """x: (b, n1, dim) image features; latents: (b, n2, dim) -> (b, n2, dim).

    Weights are in "math" layout (in_features, out_features), i.e. already the
    transpose of torch.nn.Linear.weight.
    """
    b, n1, dim = x.shape
    bl, n2, dim_l = latents.shape
    assert b == bl and dim == dim_l
    inner = heads * dim_head
    assert wq.shape == (dim, inner)
    assert wkv.shape == (dim, 2 * inner)
    assert wo.shape == (inner, dim)
    assert n1 % 8 == 0 and n2 % 8 == 0, "sequence lengths must be sublane-aligned"

    # Flatten batch into sublanes: lane-dense 2D blocks for inputs and output.
    x2 = x.reshape(b * n1, dim)
    lat2 = latents.reshape(b * n2, dim)
    g1 = ln1_w.reshape(1, dim)
    b1 = ln1_b.reshape(1, dim)
    g2 = ln2_w.reshape(1, dim)
    b2 = ln2_b.reshape(1, dim)

    kernel = functools.partial(_perceiver_attention_kernel,
                               heads=heads, dim_head=dim_head, eps=eps)

    out2 = pl.pallas_call(
        kernel,
        out_shape=jax.ShapeDtypeStruct((b * n2, dim), latents.dtype),
        grid_spec=pltpu.PrefetchScalarGridSpec(
            num_scalar_prefetch=0,
            grid=(b,),
            in_specs=[
                pl.BlockSpec((n1, dim), lambda i: (i, 0)),         # x (per batch)
                pl.BlockSpec((n2, dim), lambda i: (i, 0)),         # latents
                pl.BlockSpec((1, dim), lambda i: (0, 0)),          # ln1 weight
                pl.BlockSpec((1, dim), lambda i: (0, 0)),          # ln1 bias
                pl.BlockSpec((1, dim), lambda i: (0, 0)),          # ln2 weight
                pl.BlockSpec((1, dim), lambda i: (0, 0)),          # ln2 bias
                pl.BlockSpec((dim, inner), lambda i: (0, 0)),      # Wq (resident)
                pl.BlockSpec((dim, 2 * inner), lambda i: (0, 0)),  # Wkv (resident)
                pl.BlockSpec((inner, dim), lambda i: (0, 0)),      # Wout (resident)
            ],
            out_specs=pl.BlockSpec((n2, dim), lambda i: (i, 0)),
        ),
        compiler_params=pltpu.CompilerParams(
            dimension_semantics=("parallel",),
            vmem_limit_bytes=64 << 20),
    )(x2, lat2, g1, b1, g2, b2, wq, wkv, wo)
    return out2.reshape(b, n2, dim)


def _reference(x, latents, ln1_w, ln1_b, ln2_w, ln2_b, wq, wkv, wo, *,
               heads, dim_head, eps=1e-5):
    hp = lax.Precision.HIGHEST

    def ln(v, g, b):
        mu = jnp.mean(v, axis=-1, keepdims=True)
        var = jnp.mean((v - mu) ** 2, axis=-1, keepdims=True)
        return (v - mu) * lax.rsqrt(var + eps) * g + b

    xn = ln(x, ln1_w, ln1_b)
    latn = ln(latents, ln2_w, ln2_b)
    b, l, _ = latn.shape
    inner = heads * dim_head

    q = jnp.einsum('bnd,de->bne', latn, wq, precision=hp)
    kv_in = jnp.concatenate([xn, latn], axis=1)
    kv = jnp.einsum('bnd,de->bne', kv_in, wkv, precision=hp)
    k, v = kv[..., :inner], kv[..., inner:]

    def split_heads(t):  # == reshape_tensor
        bs, length, _ = t.shape
        return t.reshape(bs, length, heads, dim_head).transpose(0, 2, 1, 3)

    qh, kh, vh = split_heads(q), split_heads(k), split_heads(v)
    scale = 1 / math.sqrt(math.sqrt(dim_head))
    w = jnp.einsum('bhqd,bhkd->bhqk', qh * scale, kh * scale, precision=hp)
    w = jax.nn.softmax(w.astype(jnp.float32), axis=-1).astype(w.dtype)
    out = jnp.einsum('bhqk,bhkd->bhqd', w, vh, precision=hp)
    out = out.transpose(0, 2, 1, 3).reshape(b, l, inner)
    return jnp.einsum('bne,ed->bnd', out, wo, precision=hp)


if __name__ == "__main__":
    batch = 2
    dim = 128
    heads = 4
    dim_head = 32
    n1 = 32   # image feature tokens
    n2 = 16   # latent tokens
    inner = heads * dim_head

    key = jax.random.PRNGKey(0)
    kx, kl, kq, kkv, ko, kg1, kb1, kg2, kb2 = jax.random.split(key, 9)

    x = jax.random.normal(kx, (batch, n1, dim), dtype=jnp.float32)
    latents = jax.random.normal(kl, (batch, n2, dim), dtype=jnp.float32)

    wq = jax.random.normal(kq, (dim, inner), dtype=jnp.float32) * (dim ** -0.5)
    wkv = jax.random.normal(kkv, (dim, 2 * inner), dtype=jnp.float32) * (dim ** -0.5)
    wo = jax.random.normal(ko, (inner, dim), dtype=jnp.float32) * (inner ** -0.5)
    ln1_w = jnp.ones((dim,), jnp.float32) + 0.1 * jax.random.normal(kg1, (dim,))
    ln1_b = 0.1 * jax.random.normal(kb1, (dim,), dtype=jnp.float32)
    ln2_w = jnp.ones((dim,), jnp.float32) + 0.1 * jax.random.normal(kg2, (dim,))
    ln2_b = 0.1 * jax.random.normal(kb2, (dim,), dtype=jnp.float32)

    out = perceiver_attention(x, latents, ln1_w, ln1_b, ln2_w, ln2_b,
                              wq, wkv, wo, heads=heads, dim_head=dim_head)
    out = jax.block_until_ready(out)

    ref = _reference(x, latents, ln1_w, ln1_b, ln2_w, ln2_b, wq, wkv, wo,
                     heads=heads, dim_head=dim_head)
    assert out.shape == (batch, n2, dim)
    max_err = float(jnp.max(jnp.abs(out - ref)))
    assert jnp.allclose(out, ref, atol=1e-3, rtol=1e-3), f"mismatch: {max_err}"

    print("KERNEL_OK")
</pallas_src>

<mosaic_0001>
module attributes {stable_mosaic.version = 11 : i64} {
  func.func @_perceiver_attention_kernel(%arg0: i32, %arg1: memref<32x128xf32, #tpu.memory_space<vmem>>, %arg2: memref<16x128xf32, #tpu.memory_space<vmem>>, %arg3: memref<1x128xf32, #tpu.memory_space<vmem>>, %arg4: memref<1x128xf32, #tpu.memory_space<vmem>>, %arg5: memref<1x128xf32, #tpu.memory_space<vmem>>, %arg6: memref<1x128xf32, #tpu.memory_space<vmem>>, %arg7: memref<128x128xf32, #tpu.memory_space<vmem>>, %arg8: memref<128x256xf32, #tpu.memory_space<vmem>>, %arg9: memref<128x128xf32, #tpu.memory_space<vmem>>, %arg10: memref<16x128xf32, #tpu.memory_space<vmem>>) attributes {dimension_semantics = [#tpu.dimension_semantics<parallel>], iteration_bounds = array<i64: 2>, scalar_prefetch = 0 : i64, scratch_operands = 0 : i64, tpu.core_type = #tpu.core_type<tc>, window_params = [{transform_indices = @transform_0, window_bounds = array<i64: 32, 128>}, {transform_indices = @transform_1, window_bounds = array<i64: 16, 128>}, {pipeline_mode = #tpu.pipeline_mode<synchronous>, transform_indices = @transform_2, window_bounds = array<i64: 1, 128>}, {pipeline_mode = #tpu.pipeline_mode<synchronous>, transform_indices = @transform_3, window_bounds = array<i64: 1, 128>}, {pipeline_mode = #tpu.pipeline_mode<synchronous>, transform_indices = @transform_4, window_bounds = array<i64: 1, 128>}, {pipeline_mode = #tpu.pipeline_mode<synchronous>, transform_indices = @transform_5, window_bounds = array<i64: 1, 128>}, {pipeline_mode = #tpu.pipeline_mode<synchronous>, transform_indices = @transform_6, window_bounds = array<i64: 128, 128>}, {pipeline_mode = #tpu.pipeline_mode<synchronous>, transform_indices = @transform_7, window_bounds = array<i64: 128, 256>}, {pipeline_mode = #tpu.pipeline_mode<synchronous>, transform_indices = @transform_8, window_bounds = array<i64: 128, 128>}, {transform_indices = @transform_9, window_bounds = array<i64: 16, 128>}]} {
    %c0 = arith.constant 0 : index
    %c0_0 = arith.constant 0 : index
    %0 = vector.load %arg1[%c0, %c0_0] : memref<32x128xf32, #tpu.memory_space<vmem>>, vector<32x128xf32>
    %c0_1 = arith.constant 0 : index
    %c0_2 = arith.constant 0 : index
    %1 = vector.load %arg2[%c0_1, %c0_2] : memref<16x128xf32, #tpu.memory_space<vmem>>, vector<16x128xf32>
    %c0_3 = arith.constant 0 : index
    %c0_4 = arith.constant 0 : index
    %2 = vector.load %arg3[%c0_3, %c0_4] : memref<1x128xf32, #tpu.memory_space<vmem>>, vector<1x128xf32>
    %c0_5 = arith.constant 0 : index
    %c0_6 = arith.constant 0 : index
    %3 = vector.load %arg4[%c0_5, %c0_6] : memref<1x128xf32, #tpu.memory_space<vmem>>, vector<1x128xf32>
    %cst = arith.constant dense<0.000000e+00> : vector<32xf32>
    %4 = vector.multi_reduction <add>, %0, %cst [1] : vector<32x128xf32> to vector<32xf32>
    %5 = vector.shape_cast %4 : vector<32xf32> to vector<32x1xf32>
    %cst_7 = arith.constant 1.280000e+02 : f32
    %6 = vector.broadcast %cst_7 : f32 to vector<32x1xf32>
    %7 = arith.divf %5, %6 : vector<32x1xf32>
    %8 = vector.broadcast %7 : vector<32x1xf32> to vector<32x128xf32>
    %9 = arith.subf %0, %8 : vector<32x128xf32>
    %10 = arith.mulf %9, %9 : vector<32x128xf32>
    %cst_8 = arith.constant dense<0.000000e+00> : vector<32xf32>
    %11 = vector.multi_reduction <add>, %10, %cst_8 [1] : vector<32x128xf32> to vector<32xf32>
    %12 = vector.shape_cast %11 : vector<32xf32> to vector<32x1xf32>
    %cst_9 = arith.constant 1.280000e+02 : f32
    %13 = vector.broadcast %cst_9 : f32 to vector<32x1xf32>
    %14 = arith.divf %12, %13 : vector<32x1xf32>
    %cst_10 = arith.constant 9.99999974E-6 : f32
    %15 = vector.broadcast %cst_10 : f32 to vector<32x1xf32>
    %16 = arith.addf %14, %15 : vector<32x1xf32>
    %17 = math.rsqrt %16 : vector<32x1xf32>
    %18 = vector.broadcast %17 : vector<32x1xf32> to vector<32x128xf32>
    %19 = arith.mulf %9, %18 : vector<32x128xf32>
    %20 = vector.broadcast %2 : vector<1x128xf32> to vector<32x128xf32>
    %21 = arith.mulf %19, %20 : vector<32x128xf32>
    %22 = vector.broadcast %3 : vector<1x128xf32> to vector<32x128xf32>
    %23 = arith.addf %21, %22 : vector<32x128xf32>
    %c0_11 = arith.constant 0 : index
    %c0_12 = arith.constant 0 : index
    %24 = vector.load %arg5[%c0_11, %c0_12] : memref<1x128xf32, #tpu.memory_space<vmem>>, vector<1x128xf32>
    %c0_13 = arith.constant 0 : index
    %c0_14 = arith.constant 0 : index
    %25 = vector.load %arg6[%c0_13, %c0_14] : memref<1x128xf32, #tpu.memory_space<vmem>>, vector<1x128xf32>
    %cst_15 = arith.constant dense<0.000000e+00> : vector<16xf32>
    %26 = vector.multi_reduction <add>, %1, %cst_15 [1] : vector<16x128xf32> to vector<16xf32>
    %27 = vector.shape_cast %26 : vector<16xf32> to vector<16x1xf32>
    %cst_16 = arith.constant 1.280000e+02 : f32
    %28 = vector.broadcast %cst_16 : f32 to vector<16x1xf32>
    %29 = arith.divf %27, %28 : vector<16x1xf32>
    %30 = vector.broadcast %29 : vector<16x1xf32> to vector<16x128xf32>
    %31 = arith.subf %1, %30 : vector<16x128xf32>
    %32 = arith.mulf %31, %31 : vector<16x128xf32>
    %cst_17 = arith.constant dense<0.000000e+00> : vector<16xf32>
    %33 = vector.multi_reduction <add>, %32, %cst_17 [1] : vector<16x128xf32> to vector<16xf32>
    %34 = vector.shape_cast %33 : vector<16xf32> to vector<16x1xf32>
    %cst_18 = arith.constant 1.280000e+02 : f32
    %35 = vector.broadcast %cst_18 : f32 to vector<16x1xf32>
    %36 = arith.divf %34, %35 : vector<16x1xf32>
    %cst_19 = arith.constant 9.99999974E-6 : f32
    %37 = vector.broadcast %cst_19 : f32 to vector<16x1xf32>
    %38 = arith.addf %36, %37 : vector<16x1xf32>
    %39 = math.rsqrt %38 : vector<16x1xf32>
    %40 = vector.broadcast %39 : vector<16x1xf32> to vector<16x128xf32>
    %41 = arith.mulf %31, %40 : vector<16x128xf32>
    %42 = vector.broadcast %24 : vector<1x128xf32> to vector<16x128xf32>
    %43 = arith.mulf %41, %42 : vector<16x128xf32>
    %44 = vector.broadcast %25 : vector<1x128xf32> to vector<16x128xf32>
    %45 = arith.addf %43, %44 : vector<16x128xf32>
    %c0_20 = arith.constant 0 : index
    %c0_21 = arith.constant 0 : index
    %46 = vector.load %arg7[%c0_20, %c0_21] : memref<128x128xf32, #tpu.memory_space<vmem>>, vector<128x128xf32>
    %cst_22 = arith.constant dense<0.000000e+00> : vector<16x128xf32>
    %47 = tpu.matmul %45, %46, %cst_22 {dimension_numbers = #tpu.dot_dimension_numbers<[1], [0], [0], [1], [0, 0, 1, 1], [], []>} : vector<16x128xf32>, vector<128x128xf32>, vector<16x128xf32> -> vector<16x128xf32>
    %cst_23 = arith.constant 0.420448214 : f32
    %48 = vector.broadcast %cst_23 : f32 to vector<16x128xf32>
    %49 = arith.mulf %47, %48 : vector<16x128xf32>
    %50 = tpu.concatenate %23, %45 in 0 : vector<32x128xf32>, vector<16x128xf32> -> vector<48x128xf32>
    %c0_24 = arith.constant 0 : index
    %c0_25 = arith.constant 0 : index
    %51 = vector.load %arg8[%c0_24, %c0_25] : memref<128x256xf32, #tpu.memory_space<vmem>>, vector<128x256xf32>
    %cst_26 = arith.constant dense<0.000000e+00> : vector<48x256xf32>
    %52 = tpu.matmul %50, %51, %cst_26 {dimension_numbers = #tpu.dot_dimension_numbers<[1], [0], [0], [1], [0, 0, 1, 1], [], []>} : vector<48x128xf32>, vector<128x256xf32>, vector<48x256xf32> -> vector<48x256xf32>
    %53 = vector.extract_strided_slice %52 {offsets = [0, 0], sizes = [48, 128], strides = [1, 1]} : vector<48x256xf32> to vector<48x128xf32>
    %cst_27 = arith.constant 0.420448214 : f32
    %54 = vector.broadcast %cst_27 : f32 to vector<48x128xf32>
    %55 = arith.mulf %53, %54 : vector<48x128xf32>
    %56 = vector.extract_strided_slice %52 {offsets = [0, 128], sizes = [48, 128], strides = [1, 1]} : vector<48x256xf32> to vector<48x128xf32>
    %c0_28 = arith.constant 0 : index
    %c0_29 = arith.constant 0 : index
    %57 = vector.load %arg9[%c0_28, %c0_29] : memref<128x128xf32, #tpu.memory_space<vmem>>, vector<128x128xf32>
    %cst_30 = arith.constant 0.000000e+00 : f32
    %58 = vector.broadcast %cst_30 : f32 to vector<16x128xf32>
    %59 = vector.extract_strided_slice %49 {offsets = [0, 0], sizes = [16, 32], strides = [1, 1]} : vector<16x128xf32> to vector<16x32xf32>
    %60 = vector.extract_strided_slice %55 {offsets = [0, 0], sizes = [48, 32], strides = [1, 1]} : vector<48x128xf32> to vector<48x32xf32>
    %61 = vector.extract_strided_slice %56 {offsets = [0, 0], sizes = [48, 32], strides = [1, 1]} : vector<48x128xf32> to vector<48x32xf32>
    %cst_31 = arith.constant dense<0.000000e+00> : vector<16x48xf32>
    %62 = tpu.matmul %59, %60, %cst_31 {dimension_numbers = #tpu.dot_dimension_numbers<[1], [1], [0], [0], [0, 0, 1, 0], [], []>} : vector<16x32xf32>, vector<48x32xf32>, vector<16x48xf32> -> vector<16x48xf32>
    %cst_32 = arith.constant dense<0xFF800000> : vector<16xf32>
    %63 = vector.multi_reduction <maximumf>, %62, %cst_32 [1] : vector<16x48xf32> to vector<16xf32>
    %64 = vector.shape_cast %63 : vector<16xf32> to vector<16x1xf32>
    %65 = vector.broadcast %64 : vector<16x1xf32> to vector<16x48xf32>
    %66 = arith.subf %62, %65 : vector<16x48xf32>
    %67 = math.exp %66 : vector<16x48xf32>
    %cst_33 = arith.constant dense<0.000000e+00> : vector<16xf32>
    %68 = vector.multi_reduction <add>, %67, %cst_33 [1] : vector<16x48xf32> to vector<16xf32>
    %69 = vector.shape_cast %68 : vector<16xf32> to vector<16x1xf32>
    %70 = tpu.reciprocal %69 : vector<16x1xf32> -> vector<16x1xf32>
    %71 = vector.broadcast %70 : vector<16x1xf32> to vector<16x48xf32>
    %72 = arith.mulf %67, %71 : vector<16x48xf32>
    %cst_34 = arith.constant dense<0.000000e+00> : vector<16x32xf32>
    %73 = tpu.matmul %72, %61, %cst_34 {dimension_numbers = #tpu.dot_dimension_numbers<[1], [0], [0], [1], [0, 0, 1, 1], [], []>} : vector<16x48xf32>, vector<48x32xf32>, vector<16x32xf32> -> vector<16x32xf32>
    %74 = vector.extract_strided_slice %57 {offsets = [0, 0], sizes = [32, 128], strides = [1, 1]} : vector<128x128xf32> to vector<32x128xf32>
    %cst_35 = arith.constant dense<0.000000e+00> : vector<16x128xf32>
    %75 = tpu.matmul %73, %74, %cst_35 {dimension_numbers = #tpu.dot_dimension_numbers<[1], [0], [0], [1], [0, 0, 1, 1], [], []>} : vector<16x32xf32>, vector<32x128xf32>, vector<16x128xf32> -> vector<16x128xf32>
    %76 = arith.addf %58, %75 : vector<16x128xf32>
    %77 = vector.extract_strided_slice %49 {offsets = [0, 32], sizes = [16, 32], strides = [1, 1]} : vector<16x128xf32> to vector<16x32xf32>
    %78 = vector.extract_strided_slice %55 {offsets = [0, 32], sizes = [48, 32], strides = [1, 1]} : vector<48x128xf32> to vector<48x32xf32>
    %79 = vector.extract_strided_slice %56 {offsets = [0, 32], sizes = [48, 32], strides = [1, 1]} : vector<48x128xf32> to vector<48x32xf32>
    %cst_36 = arith.constant dense<0.000000e+00> : vector<16x48xf32>
    %80 = tpu.matmul %77, %78, %cst_36 {dimension_numbers = #tpu.dot_dimension_numbers<[1], [1], [0], [0], [0, 0, 1, 0], [], []>} : vector<16x32xf32>, vector<48x32xf32>, vector<16x48xf32> -> vector<16x48xf32>
    %cst_37 = arith.constant dense<0xFF800000> : vector<16xf32>
    %81 = vector.multi_reduction <maximumf>, %80, %cst_37 [1] : vector<16x48xf32> to vector<16xf32>
    %82 = vector.shape_cast %81 : vector<16xf32> to vector<16x1xf32>
    %83 = vector.broadcast %82 : vector<16x1xf32> to vector<16x48xf32>
    %84 = arith.subf %80, %83 : vector<16x48xf32>
    %85 = math.exp %84 : vector<16x48xf32>
    %cst_38 = arith.constant dense<0.000000e+00> : vector<16xf32>
    %86 = vector.multi_reduction <add>, %85, %cst_38 [1] : vector<16x48xf32> to vector<16xf32>
    %87 = vector.shape_cast %86 : vector<16xf32> to vector<16x1xf32>
    %88 = tpu.reciprocal %87 : vector<16x1xf32> -> vector<16x1xf32>
    %89 = vector.broadcast %88 : vector<16x1xf32> to vector<16x48xf32>
    %90 = arith.mulf %85, %89 : vector<16x48xf32>
    %cst_39 = arith.constant dense<0.000000e+00> : vector<16x32xf32>
    %91 = tpu.matmul %90, %79, %cst_39 {dimension_numbers = #tpu.dot_dimension_numbers<[1], [0], [0], [1], [0, 0, 1, 1], [], []>} : vector<16x48xf32>, vector<48x32xf32>, vector<16x32xf32> -> vector<16x32xf32>
    %92 = vector.extract_strided_slice %57 {offsets = [32, 0], sizes = [32, 128], strides = [1, 1]} : vector<128x128xf32> to vector<32x128xf32>
    %cst_40 = arith.constant dense<0.000000e+00> : vector<16x128xf32>
    %93 = tpu.matmul %91, %92, %cst_40 {dimension_numbers = #tpu.dot_dimension_numbers<[1], [0], [0], [1], [0, 0, 1, 1], [], []>} : vector<16x32xf32>, vector<32x128xf32>, vector<16x128xf32> -> vector<16x128xf32>
    %94 = arith.addf %76, %93 : vector<16x128xf32>
    %95 = vector.extract_strided_slice %49 {offsets = [0, 64], sizes = [16, 32], strides = [1, 1]} : vector<16x128xf32> to vector<16x32xf32>
    %96 = vector.extract_strided_slice %55 {offsets = [0, 64], sizes = [48, 32], strides = [1, 1]} : vector<48x128xf32> to vector<48x32xf32>
    %97 = vector.extract_strided_slice %56 {offsets = [0, 64], sizes = [48, 32], strides = [1, 1]} : vector<48x128xf32> to vector<48x32xf32>
    %cst_41 = arith.constant dense<0.000000e+00> : vector<16x48xf32>
    %98 = tpu.matmul %95, %96, %cst_41 {dimension_numbers = #tpu.dot_dimension_numbers<[1], [1], [0], [0], [0, 0, 1, 0], [], []>} : vector<16x32xf32>, vector<48x32xf32>, vector<16x48xf32> -> vector<16x48xf32>
    %cst_42 = arith.constant dense<0xFF800000> : vector<16xf32>
    %99 = vector.multi_reduction <maximumf>, %98, %cst_42 [1] : vector<16x48xf32> to vector<16xf32>
    %100 = vector.shape_cast %99 : vector<16xf32> to vector<16x1xf32>
    %101 = vector.broadcast %100 : vector<16x1xf32> to vector<16x48xf32>
    %102 = arith.subf %98, %101 : vector<16x48xf32>
    %103 = math.exp %102 : vector<16x48xf32>
    %cst_43 = arith.constant dense<0.000000e+00> : vector<16xf32>
    %104 = vector.multi_reduction <add>, %103, %cst_43 [1] : vector<16x48xf32> to vector<16xf32>
    %105 = vector.shape_cast %104 : vector<16xf32> to vector<16x1xf32>
    %106 = tpu.reciprocal %105 : vector<16x1xf32> -> vector<16x1xf32>
    %107 = vector.broadcast %106 : vector<16x1xf32> to vector<16x48xf32>
    %108 = arith.mulf %103, %107 : vector<16x48xf32>
    %cst_44 = arith.constant dense<0.000000e+00> : vector<16x32xf32>
    %109 = tpu.matmul %108, %97, %cst_44 {dimension_numbers = #tpu.dot_dimension_numbers<[1], [0], [0], [1], [0, 0, 1, 1], [], []>} : vector<16x48xf32>, vector<48x32xf32>, vector<16x32xf32> -> vector<16x32xf32>
    %110 = vector.extract_strided_slice %57 {offsets = [64, 0], sizes = [32, 128], strides = [1, 1]} : vector<128x128xf32> to vector<32x128xf32>
    %cst_45 = arith.constant dense<0.000000e+00> : vector<16x128xf32>
    %111 = tpu.matmul %109, %110, %cst_45 {dimension_numbers = #tpu.dot_dimension_numbers<[1], [0], [0], [1], [0, 0, 1, 1], [], []>} : vector<16x32xf32>, vector<32x128xf32>, vector<16x128xf32> -> vector<16x128xf32>
    %112 = arith.addf %94, %111 : vector<16x128xf32>
    %113 = vector.extract_strided_slice %49 {offsets = [0, 96], sizes = [16, 32], strides = [1, 1]} : vector<16x128xf32> to vector<16x32xf32>
    %114 = vector.extract_strided_slice %55 {offsets = [0, 96], sizes = [48, 32], strides = [1, 1]} : vector<48x128xf32> to vector<48x32xf32>
    %115 = vector.extract_strided_slice %56 {offsets = [0, 96], sizes = [48, 32], strides = [1, 1]} : vector<48x128xf32> to vector<48x32xf32>
    %cst_46 = arith.constant dense<0.000000e+00> : vector<16x48xf32>
    %116 = tpu.matmul %113, %114, %cst_46 {dimension_numbers = #tpu.dot_dimension_numbers<[1], [1], [0], [0], [0, 0, 1, 0], [], []>} : vector<16x32xf32>, vector<48x32xf32>, vector<16x48xf32> -> vector<16x48xf32>
    %cst_47 = arith.constant dense<0xFF800000> : vector<16xf32>
    %117 = vector.multi_reduction <maximumf>, %116, %cst_47 [1] : vector<16x48xf32> to vector<16xf32>
    %118 = vector.shape_cast %117 : vector<16xf32> to vector<16x1xf32>
    %119 = vector.broadcast %118 : vector<16x1xf32> to vector<16x48xf32>
    %120 = arith.subf %116, %119 : vector<16x48xf32>
    %121 = math.exp %120 : vector<16x48xf32>
    %cst_48 = arith.constant dense<0.000000e+00> : vector<16xf32>
    %122 = vector.multi_reduction <add>, %121, %cst_48 [1] : vector<16x48xf32> to vector<16xf32>
    %123 = vector.shape_cast %122 : vector<16xf32> to vector<16x1xf32>
    %124 = tpu.reciprocal %123 : vector<16x1xf32> -> vector<16x1xf32>
    %125 = vector.broadcast %124 : vector<16x1xf32> to vector<16x48xf32>
    %126 = arith.mulf %121, %125 : vector<16x48xf32>
    %cst_49 = arith.constant dense<0.000000e+00> : vector<16x32xf32>
    %127 = tpu.matmul %126, %115, %cst_49 {dimension_numbers = #tpu.dot_dimension_numbers<[1], [0], [0], [1], [0, 0, 1, 1], [], []>} : vector<16x48xf32>, vector<48x32xf32>, vector<16x32xf32> -> vector<16x32xf32>
    %128 = vector.extract_strided_slice %57 {offsets = [96, 0], sizes = [32, 128], strides = [1, 1]} : vector<128x128xf32> to vector<32x128xf32>
    %cst_50 = arith.constant dense<0.000000e+00> : vector<16x128xf32>
    %129 = tpu.matmul %127, %128, %cst_50 {dimension_numbers = #tpu.dot_dimension_numbers<[1], [0], [0], [1], [0, 0, 1, 1], [], []>} : vector<16x32xf32>, vector<32x128xf32>, vector<16x128xf32> -> vector<16x128xf32>
    %130 = arith.addf %112, %129 : vector<16x128xf32>
    %c0_51 = arith.constant 0 : index
    %c0_52 = arith.constant 0 : index
    %131 = vector.load %arg10[%c0_51, %c0_52] : memref<16x128xf32, #tpu.memory_space<vmem>>, vector<16x128xf32>
    tpu.vector_store %arg10[%c0_51, %c0_52], %130 {strides = array<i32>} : memref<16x128xf32, #tpu.memory_space<vmem>>, vector<16x128xf32>,
    return
  }
  func.func @transform_0(%arg0: i32) -> (i32, i32) {
    %c0_i32 = arith.constant 0 : i32
    %c0_i32_0 = arith.constant 0 : i32
    return %arg0, %c0_i32 : i32, i32
  }
  func.func @transform_1(%arg0: i32) -> (i32, i32) {
    %c0_i32 = arith.constant 0 : i32
    %c0_i32_0 = arith.constant 0 : i32
    return %arg0, %c0_i32 : i32, i32
  }
  func.func @transform_2(%arg0: i32) -> (i32, i32) {
    %c0_i32 = arith.constant 0 : i32
    %c0_i32_0 = arith.constant 0 : i32
    %c0_i32_1 = arith.constant 0 : i32
    return %c0_i32, %c0_i32_0 : i32, i32
  }
  func.func @transform_3(%arg0: i32) -> (i32, i32) {
    %c0_i32 = arith.constant 0 : i32
    %c0_i32_0 = arith.constant 0 : i32
    %c0_i32_1 = arith.constant 0 : i32
    return %c0_i32, %c0_i32_0 : i32, i32
  }
  func.func @transform_4(%arg0: i32) -> (i32, i32) {
    %c0_i32 = arith.constant 0 : i32
    %c0_i32_0 = arith.constant 0 : i32
    %c0_i32_1 = arith.constant 0 : i32
    return %c0_i32, %c0_i32_0 : i32, i32
  }
  func.func @transform_5(%arg0: i32) -> (i32, i32) {
    %c0_i32 = arith.constant 0 : i32
    %c0_i32_0 = arith.constant 0 : i32
    %c0_i32_1 = arith.constant 0 : i32
    return %c0_i32, %c0_i32_0 : i32, i32
  }
  func.func @transform_6(%arg0: i32) -> (i32, i32) {
    %c0_i32 = arith.constant 0 : i32
    %c0_i32_0 = arith.constant 0 : i32
    %c0_i32_1 = arith.constant 0 : i32
    return %c0_i32, %c0_i32_0 : i32, i32
  }
  func.func @transform_7(%arg0: i32) -> (i32, i32) {
    %c0_i32 = arith.constant 0 : i32
    %c0_i32_0 = arith.constant 0 : i32
    %c0_i32_1 = arith.constant 0 : i32
    return %c0_i32, %c0_i32_0 : i32, i32
  }
  func.func @transform_8(%arg0: i32) -> (i32, i32) {
    %c0_i32 = arith.constant 0 : i32
    %c0_i32_0 = arith.constant 0 : i32
    %c0_i32_1 = arith.constant 0 : i32
    return %c0_i32, %c0_i32_0 : i32, i32
  }
  func.func @transform_9(%arg0: i32) -> (i32, i32) {
    %c0_i32 = arith.constant 0 : i32
    %c0_i32_0 = arith.constant 0 : i32
    return %arg0, %c0_i32 : i32, i32
  }
}

</mosaic_0001>

<bundles_post_ra>
// kernel: tpu_custom_call.1
= control target key start
LH: loop header
LB: loop body
LE: loop exit
PB: predicated region body
PF: predicated region fallthrough
CT: control target
= control target key end

     0   :  { %s2751_s0 = inlined_call_operand.hbm [shape: f32[64,128], index: 0, kind: input, shape index: {}]   ;;  %s2752_s1 = inlined_call_operand.hbm [shape: f32[32,128], index: 1, kind: input, shape index: {}]   ;;  %s2753_s2 = inlined_call_operand.vmem [shape: f32[1,128], index: 2, kind: input, shape index: {}]   ;;  %s2754_s3 = inlined_call_operand.vmem [shape: f32[1,128], index: 3, kind: input, shape index: {}]   ;;  %s2755_s4 = inlined_call_operand.vmem [shape: f32[1,128], index: 4, kind: input, shape index: {}]   ;;  %s2756_s5 = inlined_call_operand.vmem [shape: f32[1,128], index: 5, kind: input, shape index: {}]   ;;  %s2757_s6 = inlined_call_operand.hbm [shape: f32[128,128], index: 6, kind: input, shape index: {}]   ;;  %s2758_s7 = inlined_call_operand.hbm [shape: f32[128,256], index: 7, kind: input, shape index: {}]   ;;  %s2759_s8 = inlined_call_operand.hbm [shape: f32[128,128], index: 8, kind: input, shape index: {}]   ;;  %s2760_s9 = inlined_call_operand.hbm [shape: f32[32,128], index: 9, kind: output, shape index: {}]  }
   0x1   :  { %2770 = sst [smem:[#allocation22_spill]] %s2757_s6 }
   0x2   :  { %2771 = sst [smem:[#allocation23_spill]] %s2758_s7 }
   0x3   :  { %2772 = sst [smem:[#allocation24_spill]] %s2759_s8 }
   0x4   :  { %14 = vsyncpa [#allocation3], 0 }
   0x5   :  { %16 = vsyncpa [#allocation3 + $0x1], 0 }
   0x6   :  { %17 = vsyncpa [#allocation6], 0 }
   0x7   :  { %19 = vsyncpa [#allocation6 + $0x1], 0 }
   0x8   :  { %20 = vsyncpa [#allocation9], 0 }
   0x9   :  { %21 = vsyncpa [#allocation4], 0 }
   0xa   :  { %23 = vsyncpa [#allocation4 + $0x1], 0  ;;  %s2172_s30 = smov 0   ;;  %s2174_s10 = smov 0  }
   0xb   :  { %s2176_s11 = smov 0   ;;  %s2178_s12 = smov 0  }
   0xc LB: > { %2773 = sst [smem:[#allocation17_spill]] %s2095_s30  ;;  %s2193_s13 = sadd.s32 4294967295, %s2107_s12   ;;  %s2107_s12 = sphi %s2178_s12, %s2802_s12   ;;  %s2103_s11 = sphi %s2176_s11, %s2804_s11   ;;  %s2099_s10 = sphi %s2174_s10, %s2806_s10   ;;  %s2095_s30 = sphi %s2172_s30, %s2805_s30  }
   0xd   : > { %2774 = sst [smem:[#allocation18_spill]] %s2103_s11  ;;  %s1617_s14 = sadd.s32 4294967294, %s2107_s12  }
   0xe   : > { %p49_p0 = scmp.ne.s32.totalorder %s2099_s10, %s2095_s30  ;;  %p50_p1 = scmp.eq.s32.totalorder %s2193_s13, 0 }
   0xf   : > { %p246_p2 = scmp.eq.s32.totalorder %s2193_s13, 1  ;;  %p252_p3 = scmp.eq.s32.totalorder %s1617_s14, 1 }
  0x10   : > { %p2202_p4 = por %p50_p1, %p49_p0  ;;  %p1618_p5 = scmp.ge.s32.totalorder %s2107_s12, 1 }
  0x11   : > { %p2207_p6 = por %p252_p3, %p49_p0  ;;  %p259_p7 = scmp.lt.s32.totalorder %s2107_s12, 3 }
  0x12   : > { %s2778_s6 = sld [smem:[#allocation22_spill]]  ;;  %s2109_s21 = smov [#allocation7]  }
  0x13   : > { %s2776_s16 = scalar_select %p2207_p6, 1, 0 }
  0x14   : > { %p2215_p8 = pnand %p1618_p5, %p259_p7  ;;  %s284_s22 = sshll.u32 %s2109_s21, 4  ;;  %s285_s22 = int_to_ptr.vmem [resolvable:$true] %s284_s22 }
  0x15   : > { %2777 = sst [smem:[#allocation19_spill]] %s2776_s16  ;;  %s2761_s27 = smov 128  }
  0x16   : > { %p1710_p9 = pneg %p2215_p8  ;;  %s2781_s7 = sld [smem:[#allocation23_spill]] }
  0x17   : > { %s2763_s28 = smov 8   ;;  %s2112_s29 = smov [#allocation8]  }
  0x18   : > { %s282_s19 = sshll.u32 %s2778_s6, 4  ;;  %p2223_p10 = pnand %p1710_p9, %p50_p1  ;;  %s283_s19 = int_to_ptr.hbm [resolvable:$true] %s282_s19 }
  0x19   : > { %s298_s14 = sshll.u32 %s2112_s29, 4  ;;  %s2113_s17 = smov 256   ;;  %s299_s14 = int_to_ptr.vmem [resolvable:$true] %s298_s14 }
  0x1a   : > { %1713 = dma.hbm_to_vmem [thread:$0]  (!%p2223_p10), %s283_s19, 2048, %s285_s22, [#allocation6], %s2761_s27, %s2761_s27, %s2763_s28  }
  0x1b   : > { %s2114_s18 = smov 16   ;;  %s2782_s8 = sld [smem:[#allocation24_spill]] }
  0x1c   : > { %s296_s26 = sshll.u32 %s2781_s7, 4  ;;  %s2115_s19 = smov [#allocation10]   ;;  %s297_s26 = int_to_ptr.hbm [resolvable:$true] %s296_s26 }
  0x1d   : > { %1716 = dma.hbm_to_vmem [thread:$0]  (!%p2223_p10), %s297_s26, 4096, %s299_s14, [#allocation9], %s2113_s17, %s2113_s17, %s2114_s18  }
  0x1e   : > { %s312_s22 = sshll.u32 %s2115_s19, 4  ;;  %s2247_s29 = sadd.s32 1, %s2107_s12   ;;  %s313_s22 = int_to_ptr.vmem [resolvable:$true] %s312_s22 }
  0x1f   : > { %2783 = sst [smem:[#allocation20_spill]] %s2247_s29  ;;  %s33_s26 = ssub.s32 %s2107_s12, %s2247_s29 }
  0x20   : > { %s36_s14 = sadd.s32 1, %s2103_s11  ;;  %p34_p12 = scmp.eq.s32.totalorder %s33_s26, 0 }
  0x21   : > { %s310_s25 = sshll.u32 %s2782_s8, 4  ;;  %p43_p13 = scmp.ne.s32.totalorder %s2103_s11, %s2099_s10  ;;  %s311_s25 = int_to_ptr.hbm [resolvable:$true] %s310_s25 }
  0x22   : > { %1719 = dma.hbm_to_vmem [thread:$0]  (!%p2223_p10), %s311_s25, 2048, %s313_s22, [#allocation9], %s2761_s27, %s2761_s27, %s2763_s28  }
  0x23   : > { %p44_p0 = scmp.eq.s32.totalorder %s2107_s12, 0  ;;  %p1734_p3 = scmp.lt.s32.totalorder %s2107_s12, 2 }
  0x24   : > { %s2257_s17 = scalar_select %p34_p12, %s2103_s11, %s36_s14  }
  0x25   : > { %p45_p5 = por %p44_p0, %p43_p13  ;;  %p2261_p7 = por %p246_p2, %p43_p13 }
  0x26   : > { %2784 = sst [smem:[#allocation21_spill]] %s2257_s17  ;;  %s2266_s18 = sand.u32 1, %s2103_s11  }
  0x27   : > { %s1689_s21 = sshll.u32 %s2107_s12, 5  ;;  %s1623_s24 = sshll.u32 %s2266_s18, 5 }
  0x28   : > { %s335_s22 = scalar_lea.hbm %s2751_s0, %s1689_s21  ;;  %s330_s14 = scalar_lea.vmem [#allocation2], %s1623_s24 }
  0x29   : > { %s336_s26 = sshll.u32 %s335_s22, 4  ;;  %s338_s27 = sshll.u32 %s330_s14, 4  ;;  %s337_s26 = int_to_ptr.hbm [resolvable:$true] %s336_s26  ;;  %s339_s27 = int_to_ptr.vmem [resolvable:$true] %s338_s27 }
  0x2a   : > { %p2275_p2 = pnand %p1734_p3, %p45_p5  ;;  %s348_s6 = sand.u32 1, %s2107_s12  }
  0x2b   : > { %s1626_s7 = sshll.u32 %s2266_s18, 4  ;;  %s327_s8 = scalar_lea.sflag [#allocation3], %s2266_s18 }
  0x2c   : > { %s1969_s17 = sshra.s32 %s337_s26, 4  ;;  %p1973_p10 = pneg %p2275_p2  ;;  %s1970_s17 = int_to_ptr.hbm [resolvable:$true] %s1969_s17 }
  0x2d   : > { %s1971_s11 = scalar_lea.hbm %s1970_s17, 32  ;;  %s1976_s25 = scalar_lea.hbm %s2751_s0, 64 }
  0x2e   : > { %p1972_p9 = scmp.ne.s32.totalorder %s1970_s17, %s1971_s11  ;;  %p1977_p0 = scmp.lt.s32.totalorder %s1970_s17, %s2751_s0 }
  0x2f   : > { %p1978_p3 = scmp.lt.s32.totalorder %s1976_s25, %s1971_s11 }
  0x30   : > { %p1974_p12 = pnand %p1973_p10, %p1972_p9 }
  0x31   : > { %p1979_p5 = por %p1978_p3, %p1977_p0 }
  0x32   : > { %p1975_p13 = pneg %p1974_p12 }
  0x34   : > { %p1980_p11 = pnand %p1979_p5, %p1975_p13 }
  0x36   : > { %1983 = shalt.err (!%p1980_p11)
}
  0x37   : > { %s2787_s18 = smov 8   ;;  %s2788_s14 = smov 128  }
  0x38   : > { %1723 = dma.hbm_to_vmem [thread:$0]  (!%p2275_p2), %s337_s26, 512, %s339_s27, %s327_s8, %s2788_s14, %s2788_s14, %s2787_s18  }
  0x39   : > { %s1690_s29 = sshll.u32 %s2107_s12, 4  ;;  %s352_s16 = scalar_lea.vmem [#allocation5], %s1626_s7 }
  0x3a   : > { %s360_s21 = sshll.u32 %s352_s16, 4  ;;  %s357_s19 = scalar_lea.hbm %s2752_s1, %s1690_s29  ;;  %s361_s21 = int_to_ptr.vmem [resolvable:$true] %s360_s21 }
  0x3b   : > { %s358_s11 = sshll.u32 %s357_s19, 4  ;;  %s349_s17 = scalar_lea.sflag [#allocation6], %s348_s6  ;;  %s359_s11 = int_to_ptr.hbm [resolvable:$true] %s358_s11 }
  0x3c   : > { %s1999_s25 = sshra.s32 %s359_s11, 4  ;;  %s2006_s7 = scalar_lea.hbm %s2752_s1, 32  ;;  %s2000_s25 = int_to_ptr.hbm [resolvable:$true] %s1999_s25 }
  0x3d   : > { %s2001_s22 = scalar_lea.hbm %s2000_s25, 16  ;;  %p2007_p13 = scmp.lt.s32.totalorder %s2000_s25, %s2752_s1 }
  0x3e   : > { %p2002_p11 = scmp.ne.s32.totalorder %s2000_s25, %s2001_s22  ;;  %p2008_p0 = scmp.lt.s32.totalorder %s2006_s7, %s2001_s22 }
  0x40   : > { %p2004_p9 = pnand %p2002_p11, %p1973_p10  ;;  %p2009_p3 = por %p2008_p0, %p2007_p13 }
  0x42   : > { %p2005_p12 = pneg %p2004_p9 }
  0x44   : > { %p2010_p5 = pnand %p2009_p3, %p2005_p12 }
  0x46   : > { %2013 = shalt.err (!%p2010_p5)
}
  0x47   : > { %1726 = dma.hbm_to_vmem [thread:$0]  (!%p2275_p2), %s359_s11, 256, %s361_s21, %s349_s17, %s2788_s14, %s2788_s14, %s2787_s18  }
  0x48   : > { %372 = sbr.rel (%p2215_p8) target bundleno = 1778 (0x6f2), region = 56  ;;  %s2319_s6 = sand.u32 (!%p2215_p8), 1, %s2099_s10  }
  0x49   : > { %s1630_s30 = sshll.u32 (!%p2215_p8), %s2319_s6, 5  ;;  %s375_s29 = scalar_lea.sflag (!%p2215_p8), [#allocation3], %s2319_s6 }
  0x4a   : > { %s378_s24 = scalar_lea.vmem (!%p2215_p8), [#allocation2], %s1630_s30 }
  0x4d   : > { %2074 = dma.done.wait (%p2202_p4), %s375_s29, 512  }
  0x4e   : > { %2076 = vsyncadd (%p2202_p4), %s375_s29, 4294966784  ;;  %s384_s20 = sand.u32 1, %s2193_s13   ;;  %s1631_s28 = sshll.u32 %s2319_s6, 4 }
  0x4f   : > { %s385_s18 = scalar_lea.sflag [#allocation6], %s384_s20  ;;  %s388_s14 = scalar_lea.vmem [#allocation5], %s1631_s28 }
  0x50   : > { %2078 = dma.done.wait (%p2202_p4), %s385_s18, 256  }
  0x51   : > { %2080 = vsyncadd (%p2202_p4), %s385_s18, 4294967040 }
  0x52   : > { %2082 = dma.done.wait (%p50_p1), [#allocation6], 2048  }
  0x53   : > { %2084 = vsyncadd (%p50_p1), [#allocation6], 4294965248 }
  0x54   : > { %2086 = dma.done.wait (%p50_p1), [#allocation9], 6144  }
  0x55   : > { %2088 = vsyncadd (%p50_p1), [#allocation9], 4294961152  ;;  %v451_v0 = vld [vmem:[%s388_s14] sm:$0xff]  ;;  %v452_v3 = vld [vmem:[%s388_s14 + $0x8] sm:$0xff]  ;;  %v2116_v6 = vmov 128.0   ;;  %s2117_s27 = smov 96  }
  0x56   : > { %v449_v1 = vld [vmem:[%s378_s24 + $0x10] sm:$0xff]  ;;  %v447_v2 = vld [vmem:[%s378_s24] sm:$0xff]  ;;  %558 = vadd.xlane.f32.xlu2 %v451_v0  ;;  %v450_v4 = vld [vmem:[%s378_s24 + $0x18] sm:$0xff]  ;;  %1833 = vrcp.f32 %v2116_v6  ;;  %s2118_s7 = smov 64   ;;  %s2119_s16 = smov 32  }
  0x57   : > { %459 = vadd.xlane.f32.xlu1 %v449_v1  ;;  %455 = vadd.xlane.f32.xlu0 %v447_v2  ;;  %v448_v5 = vld [vmem:[%s378_s24 + $0x8] sm:$0xff]  ;;  %v679_v11 = vld [vmem:[#allocation8 + $0xf0] sm:$0xff]  ;;  %v680_v12 = vld [vmem:[#allocation8 + $0xf8] sm:$0xff]  ;;  %s1691_s26 = sshll.u32 %s2193_s13, 4  ;;  %s443_s20 = scalar_lea.vmem [#allocation11], %s1631_s28 }
  0x58   : > { %v677_v13 = vld [vmem:[#allocation8 + $0xe0] sm:$0xff]  ;;  %681 = vmatpush.msra.mxu1 %v679_v11  ;;  %716 = vmatpush.msra.mxu2 %v680_v12  ;;  %v678_v14 = vld [vmem:[#allocation8 + $0xe8] sm:$0xff]  ;;  %v675_v41 = vld [vmem:[#allocation8 + $0xd0] sm:$0xff]  ;;  %s1489_s24 = scalar_lea.hbm %s2760_s9, %s1691_s26  ;;  %s1490_s18 = sshll.u32 %s443_s20, 4  ;;  %s1491_s18 = int_to_ptr.vmem [resolvable:$true] %s1490_s18 }
  0x59   : > { %v676_v42 = vld [vmem:[#allocation8 + $0xd8] sm:$0xff]  ;;  %v673_v43 = vld [vmem:[#allocation8 + $0xc0] sm:$0xff]  ;;  %v674_v44 = vld [vmem:[#allocation8 + $0xc8] sm:$0xff]  ;;  %s1492_s14 = sshll.u32 %s1489_s24, 4  ;;  %s1478_s13 = scalar_lea.sflag [#allocation4], %s2319_s6  ;;  %s1493_s14 = int_to_ptr.hbm [resolvable:$true] %s1492_s14 }
  0x5a   : > { %682 = vmatpush.msra.mxu1 %v677_v13  ;;  %717 = vmatpush.msra.mxu2 %v678_v14  ;;  %v671_v45 = vld [vmem:[#allocation8 + $0xb0] sm:$0xff]  ;;  %v672_v46 = vld [vmem:[#allocation8 + $0xb8] sm:$0xff]  ;;  %v669_v47 = vld [vmem:[#allocation8 + $0xa0] sm:$0xff]  ;;  %s2043_s15 = sshra.s32 %s1493_s14, 4  ;;  %s2049_s11 = scalar_lea.hbm %s2760_s9, 32  ;;  %s2044_s15 = int_to_ptr.hbm [resolvable:$true] %s2043_s15 }
  0x5b   : > { %v670_v48 = vld [vmem:[#allocation8 + $0xa8] sm:$0xff]  ;;  %v667_v49 = vld [vmem:[#allocation8 + $0x90] sm:$0xff]  ;;  %v668_v50 = vld [vmem:[#allocation8 + $0x98] sm:$0xff]  ;;  %s2045_s21 = scalar_lea.hbm %s2044_s15, 16  ;;  %p2050_p2 = scmp.lt.s32.totalorder %s2044_s15, %s2760_s9 }
  0x5c   : > { %v1834_v7 = vpop.eup %1833  ;;  %683 = vmatpush.msra.mxu1 %v675_v41  ;;  %718 = vmatpush.msra.mxu2 %v676_v42  ;;  %v665_v51 = vld [vmem:[#allocation8 + $0x80] sm:$0xff]  ;;  %v666_v52 = vld [vmem:[#allocation8 + $0x88] sm:$0xff]  ;;  %v623_v53 = vld [vmem:[#allocation7 + $0x78] sm:$0xff]  ;;  %p2046_p1 = scmp.ne.s32.totalorder %s2044_s15, %s2045_s21  ;;  %p2051_p10 = scmp.lt.s32.totalorder %s2049_s11, %s2045_s21 }
  0x5d   : > { %v464_v8 = vmul.f32 128.0, %v1834_v7  ;;  %vm468_vm0 = vweird.f32 %v1834_v7  ;;  %v663_v54 = vld [vmem:[#allocation8 + $0x70] sm:$0xff]  ;;  %v664_v55 = vld [vmem:[#allocation8 + $0x78] sm:$0xff]  ;;  %624 = vmatpush.msra.mxu0 %v623_v53  ;;  %v661_v57 = vld [vmem:[#allocation8 + $0x60] sm:$0xff] }
  0x5e   : > { %560 = vadd.xlane.f32.xlu2 %v452_v3  ;;  %684 = vmatpush.msra.mxu1 %v673_v43  ;;  %v622_v56 = vld [vmem:[#allocation7 + $0x70] sm:$0xff]  ;;  %v662_v58 = vld [vmem:[#allocation8 + $0x68] sm:$0xff]  ;;  %v660_v61 = vld [vmem:[#allocation8 + $0x58] sm:$0xff]  ;;  %p2047_p4 = pnand %p2046_p1, %p2261_p7  ;;  %p2052_p11 = por %p2051_p10, %p2050_p2 }
  0x5f   : > { %461 = vadd.xlane.f32.xlu1 %v450_v4  ;;  %457 = vadd.xlane.f32.xlu0 %v448_v5  ;;  %v465_v9 = vsub.f32 1.0, %v464_v8  ;;  %v621_v59 = vld [vmem:[#allocation7 + $0x68] sm:$0xff]  ;;  %v659_v60 = vld [vmem:[#allocation8 + $0x50] sm:$0xff]  ;;  %v620_v62 = vld [vmem:[#allocation7 + $0x60] sm:$0xff] }
  0x60   : > { %719 = vmatpush.msra.mxu2 %v674_v44  ;;  %685 = vmatpush.msra.mxu1 %v671_v45  ;;  %v657_v63 = vld [vmem:[#allocation8 + $0x40] sm:$0xff]  ;;  %v654_v6 = vld [vmem:[#allocation8 + $0x28] sm:$0xff]  ;;  %v651_v8 = vld [vmem:[#allocation8 + $0x10] sm:$0xff]  ;;  %p2048_p8 = pneg %p2047_p4 }
  0x61   : > { %v466_v10 = vmul.f32 %v1834_v7, %v465_v9  ;;  %625 = vmatpush.msra.mxu0 %v622_v56  ;;  %v652_v9 = vld [vmem:[#allocation8 + $0x18] sm:$0xff]  ;;  %v649_v11 = vld [vmem:[#allocation8] sm:$0xff]  ;;  %v650_v12 = vld [vmem:[#allocation8 + $0x8] sm:$0xff] }
  0x62   : > { %720 = vmatpush.msra.mxu2 %v672_v46  ;;  %686 = vmatpush.msra.mxu1 %v669_v47  ;;  %v615_v13 = vld [vmem:[#allocation7 + $0x38] sm:$0xff]  ;;  %v608_v41 = vld [vmem:[#allocation7] sm:$0xff]  ;;  %p2053_p9 = pnand %p2052_p11, %p2048_p8 }
  0x63   : > { %v467_v15 = vadd.f32 %v1834_v7, %v466_v10  ;;  %626 = vmatpush.msra.mxu0 %v621_v59  ;;  %v616_v10 = vld [vmem:[#allocation7 + $0x40] sm:$0xff] }
  0x64   : > { %721 = vmatpush.msra.mxu2 %v670_v48  ;;  %687 = vmatpush.msra.mxu1 %v667_v49 }
  0x65   : > { %v2343_v16 = vsel %vm468_vm0, %v1834_v7, %v467_v15  ;;  %627 = vmatpush.msra.mxu0 %v620_v62  ;;  %v617_v7 = vld [vmem:[#allocation7 + $0x48] sm:$0xff] }
  0x66   : > { %722 = vmatpush.msra.mxu2 %v668_v50  ;;  %688 = vmatpush.msra.mxu1 %v665_v51 }
  0x68   : > { %723 = vmatpush.msra.mxu2 %v666_v52  ;;  %689 = vmatpush.msra.mxu1 %v663_v54 }
  0x6a   : > { %724 = vmatpush.msra.mxu2 %v664_v55  ;;  %690 = vmatpush.msra.mxu1 %v661_v57 }
  0x6c   : > { %725 = vmatpush.msra.mxu2 %v662_v58  ;;  %691 = vmatpush.msra.mxu1 %v659_v60 }
  0x6e   : > { %726 = vmatpush.msra.mxu2 %v660_v61  ;;  %692 = vmatpush.msra.mxu1 %v657_v63 }
  0xc9   : > { %v559_v17 = vpop.xlane.xlu2 %558 }
  0xca   : > { %v460_v18 = vpop.xlane.xlu1 %459  ;;  %v456_v20 = vpop.xlane.xlu0 %455  ;;  %v562_v34 = vmul.f32 %v559_v17, %v2343_v16 }
  0xcb   : > { %v472_v19 = vmul.f32 %v2343_v16, %v460_v18  ;;  %v470_v21 = vmul.f32 %v2343_v16, %v456_v20  ;;  %v614_v18 = vld [vmem:[#allocation7 + $0x30] sm:$0xff] }
  0xcc   : > { %v2371_v39 = vsub.f32 %v451_v0, %v562_v34  ;;  %v658_v0 = vld [vmem:[#allocation8 + $0x48] sm:$0xff] }
  0xcd   : > { %v2347_v22 = vsub.f32 %v449_v1, %v472_v19  ;;  %v2349_v23 = vsub.f32 %v447_v2, %v470_v21  ;;  %727 = vmatpush.msra.mxu2 %v658_v0  ;;  %v619_v1 = vld [vmem:[#allocation7 + $0x58] sm:$0xff]  ;;  %v655_v2 = vld [vmem:[#allocation8 + $0x30] sm:$0xff]  ;;  %v613_v21 = vld [vmem:[#allocation7 + $0x28] sm:$0xff] }
  0xce   : > { %v566_v40 = vmul.f32 %v2371_v39, %v2371_v39  ;;  %628 = vmatpush.msra.mxu0 %v619_v1  ;;  %693 = vmatpush.msra.mxu1 %v655_v2  ;;  %v609_v34 = vld [vmem:[#allocation7 + $0x8] sm:$0xff]  ;;  %v2412_v2 = vld [vmem:[%s2754_s3] ss:$0 sm:$0xff] }
  0xcf   : > { %v480_v24 = vmul.f32 %v2347_v22, %v2347_v22  ;;  %v478_v25 = vmul.f32 %v2349_v23, %v2349_v23 }
  0xd1   : > { %486 = vadd.xlane.f32.xlu2 %v480_v24  ;;  %482 = vadd.xlane.f32.xlu0 %v478_v25  ;;  %v561_v26 = vpop.xlane.xlu2 %560  ;;  %v612_v25 = vld [vmem:[#allocation7 + $0x20] sm:$0xff] }
  0xd2   : > { %v462_v27 = vpop.xlane.xlu1 %461  ;;  %v563_v28 = vmul.f32 %v561_v26, %v2343_v16  ;;  %v458_v30 = vpop.xlane.xlu0 %457  ;;  %v611_v26 = vld [vmem:[#allocation7 + $0x18] sm:$0xff] }
  0xd3   : > { %v473_v29 = vmul.f32 %v2343_v16, %v462_v27  ;;  %v471_v31 = vmul.f32 %v2343_v16, %v458_v30  ;;  %v610_v27 = vld [vmem:[#allocation7 + $0x10] sm:$0xff] }
  0xd4   : > { %v2358_v32 = vsub.f32 %v452_v3, %v563_v28  ;;  %v656_v3 = vld [vmem:[#allocation8 + $0x38] sm:$0xff] }
  0xd5   : > { %v2360_v33 = vsub.f32 %v450_v4, %v473_v29  ;;  %v2363_v35 = vsub.f32 %v448_v5, %v471_v31  ;;  %728 = vmatpush.msra.mxu2 %v656_v3  ;;  %v618_v4 = vld [vmem:[#allocation7 + $0x50] sm:$0xff]  ;;  %v653_v5 = vld [vmem:[#allocation8 + $0x20] sm:$0xff] }
  0xd6   : > { %v567_v36 = vmul.f32 %v2358_v32, %v2358_v32  ;;  %629 = vmatpush.msra.mxu0 %v618_v4  ;;  %694 = vmatpush.msra.mxu1 %v653_v5 }
  0xd7   : > { %v481_v37 = vmul.f32 %v2360_v33, %v2360_v33  ;;  %v479_v38 = vmul.f32 %v2363_v35, %v2363_v35  ;;  %729 = vmatpush.msra.mxu2 %v654_v6 }
  0xd8   : > { %630 = vmatpush.msra.mxu0 %v617_v7  ;;  %695 = vmatpush.msra.mxu1 %v651_v8 }
  0xd9   : > { %570 = vadd.xlane.f32.xlu2 %v567_v36  ;;  %488 = vadd.xlane.f32.xlu0 %v481_v37 }
  0xda   : > { %484 = vadd.xlane.f32.xlu1 %v479_v38  ;;  %730 = vmatpush.msra.mxu2 %v652_v9 }
  0xdb   : > { %631 = vmatpush.msra.mxu0 %v616_v10  ;;  %696 = vmatpush.msra.mxu1 %v649_v11 }
  0xdc   : > { %731 = vmatpush.msra.mxu2 %v650_v12 }
  0xdd   : > { %632 = vmatpush.msra.mxu0 %v615_v13 }
  0xdf   : > { %633 = vmatpush.msra.mxu0 %v614_v18 }
  0xe1   : > { %634 = vmatpush.msra.mxu0 %v613_v21 }
  0xe2   : > { %568 = vadd.xlane.f32.xlu1 %v566_v40 }
  0xe3   : > { %635 = vmatpush.msra.mxu0 %v612_v25 }
  0xe5   : > { %636 = vmatpush.msra.mxu0 %v611_v26 }
  0xe7   : > { %637 = vmatpush.msra.mxu0 %v610_v27 }
  0xe9   : > { %638 = vmatpush.msra.mxu0 %v609_v34 }
  0xeb   : > { %639 = vmatpush.msra.mxu0 %v608_v41 }
 0x144   : > { %v487_v14 = vpop.xlane.xlu2 %486  ;;  %v483_v17 = vpop.xlane.xlu0 %482 }
 0x145   : > { %v492_v15 = vmul.f32 %v487_v14, %v2343_v16  ;;  %v490_v19 = vmul.f32 %v483_v17, %v2343_v16 }
 0x147   : > { %v2377_v20 = vadd.f32 1e-05, %v492_v15  ;;  %v494_v24 = vadd.f32 1e-05, %v490_v19 }
 0x149   : > { %1835 = vrsqrt.f32 %v2377_v20  ;;  %vm504_vm2 = vweird.f32 %v494_v24  ;;  %vm524_vm4 = vweird.f32 %v2377_v20 }
 0x14a   : > { %1837 = vrsqrt.f32 %v494_v24 }
 0x14c   : > { %v571_v28 = vpop.xlane.xlu2 %570  ;;  %v489_v31 = vpop.xlane.xlu0 %488 }
 0x14d   : > { %v573_v29 = vmul.f32 %v571_v28, %v2343_v16  ;;  %v485_v30 = vpop.xlane.xlu1 %484  ;;  %v493_v37 = vmul.f32 %v489_v31, %v2343_v16 }
 0x14e   : > { %v491_v36 = vmul.f32 %v485_v30, %v2343_v16 }
 0x14f   : > { %v2383_v38 = vpop.eup %1835  ;;  %v2385_v40 = vadd.f32 1e-05, %v573_v29  ;;  %v2389_v45 = vadd.f32 1e-05, %v493_v37  ;;  %v1831_v37 = vld [vmem:[%s2755_s4] ss:$0 sm:$0xff] }
 0x150   : > { %v1838_v42 = vpop.eup %1837  ;;  %v519_v43 = vmul.f32 %v2383_v38, %v2377_v20  ;;  %v495_v44 = vadd.f32 1e-05, %v491_v36  ;;  %vm525_vm5 = vweird.f32 %v2383_v38 }
 0x151   : > { %v499_v46 = vmul.f32 %v1838_v42, %v494_v24  ;;  %1839 = vrsqrt.f32 %v2385_v40  ;;  %vm505_vm1 = vweird.f32 %v1838_v42  ;;  %vm2421_vm8 = vmor %vm524_vm4, %vm525_vm5  ;;  %vm592_vm12 = vweird.f32 %v2385_v40 }
 0x152   : > { %1841 = vrsqrt.f32 %v495_v44  ;;  %v520_v48 = vmul.f32 %v2383_v38, %v519_v43  ;;  %vm506_vm3 = vmor %vm504_vm2, %vm505_vm1  ;;  %vm514_vm7 = vweird.f32 %v495_v44  ;;  %vm534_vm14 = vweird.f32 %v2389_v45 }
 0x153   : > { %v500_v47 = vmul.f32 %v1838_v42, %v499_v46  ;;  %1843 = vrsqrt.f32 %v2389_v45  ;;  %vm821_vm4 = vcmask 392192  }
 0x154   : > { %v521_v55 = vmul.f32 0.5, %v520_v48 }
 0x155   : > { %v501_v49 = vmul.f32 0.5, %v500_v47  ;;  %v569_v50 = vpop.xlane.xlu1 %568 }
 0x156   : > { %v572_v51 = vmul.f32 %v569_v50, %v2343_v16  ;;  %v2406_v16 = vld [vmem:[%s2753_s2] ss:$0 sm:$0xff]  ;;  %v522_v0 = vsub.f32 1.5, %v521_v55 }
 0x157   : > { %v2395_v52 = vpop.eup %1839  ;;  %v502_v53 = vsub.f32 1.5, %v501_v49 }
 0x158   : > { %v1842_v54 = vpop.eup %1841  ;;  %v574_v56 = vadd.f32 1e-05, %v572_v51  ;;  %v587_v59 = vmul.f32 %v2395_v52, %v2385_v40  ;;  %vm593_vm13 = vweird.f32 %v2395_v52 }
 0x159   : > { %v2397_v57 = vpop.eup %1843  ;;  %v503_v58 = vmul.f32 %v1838_v42, %v502_v53  ;;  %v509_v60 = vmul.f32 %v1842_v54, %v495_v44  ;;  %vm515_vm6 = vweird.f32 %v1842_v54  ;;  %vm2437_vm1 = vmor %vm592_vm12, %vm593_vm13 }
 0x15a   : > { %v529_v61 = vmul.f32 %v2397_v57, %v2389_v45  ;;  %1845 = vrsqrt.f32 %v574_v56  ;;  %v588_v3 = vmul.f32 %v2395_v52, %v587_v59  ;;  %vm516_vm9 = vmor %vm514_vm7, %vm515_vm6  ;;  %vm582_vm10 = vweird.f32 %v574_v56 }
 0x15b   : > { %v510_v62 = vmul.f32 %v1842_v54, %v509_v60  ;;  %v507_v63 = vsel %vm506_vm3, %v1838_v42, %v503_v58  ;;  %vm535_vm15 = vweird.f32 %v2397_v57  ;;  %v1832_v42 = vld [vmem:[%s2756_s5] ss:$0 sm:$0xff]  ;;  %vm773_vm3 = vcmask 261120  }
 0x15c   : > { %v538_v1 = vmul.f32 %v507_v63, %v2349_v23  ;;  %v530_v5 = vmul.f32 %v2397_v57, %v529_v61  ;;  %v523_v23 = vmul.f32 %v2383_v38, %v522_v0  ;;  %v589_v11 = vmul.f32 0.5, %v588_v3  ;;  %vm536_vm2 = vmor %vm534_vm14, %vm535_vm15 }
 0x15d   : > { %v511_v4 = vmul.f32 0.5, %v510_v62 }
 0x15e   : > { %v545_v6 = vmul.f32 %v2406_v16, %v538_v1  ;;  %v531_v13 = vmul.f32 0.5, %v530_v5  ;;  %v527_v19 = vsel %vm2421_vm8, %v2383_v38, %v523_v23  ;;  %v590_v20 = vsub.f32 1.5, %v589_v11 }
 0x15f   : > { %v512_v7 = vsub.f32 1.5, %v511_v4  ;;  %v540_v27 = vmul.f32 %v527_v19, %v2347_v22 }
 0x160   : > { %v1846_v8 = vpop.eup %1845  ;;  %v552_v9 = vadd.f32 %v2412_v2, %v545_v6  ;;  %v532_v21 = vsub.f32 1.5, %v531_v13  ;;  %v591_v28 = vmul.f32 %v2395_v52, %v590_v20 }
 0x161   : > { %v513_v12 = vmul.f32 %v1842_v54, %v512_v7  ;;  %v577_v14 = vmul.f32 %v1846_v8, %v574_v56  ;;  %vm583_vm11 = vweird.f32 %v1846_v8  ;;  %v547_v22 = vmul.f32 %v2406_v16, %v540_v27 }
 0x162   : > { %697 = vmatmul.f32.vlgmr.msra.gmra.mxu1 %v552_v9  ;;  %732 = vmatmul.f32.vlgmr.msra.gmra.mxu2 %v552_v9  ;;  %vm584_vm0 = vmor %vm582_vm10, %vm583_vm11  ;;  %v533_v30 = vmul.f32 %v2397_v57, %v532_v21  ;;  %v595_v38 = vsel %vm2437_vm1, %v2395_v52, %v591_v28 }
 0x163   : > { %v578_v15 = vmul.f32 %v1846_v8, %v577_v14  ;;  %v517_v17 = vsel %vm516_vm9, %v1842_v54, %v513_v12  ;;  %v597_v44 = vmul.f32 %v595_v38, %v2358_v32 }
 0x164   : > { %v539_v18 = vmul.f32 %v517_v17, %v2363_v35  ;;  %v537_v40 = vsel %vm536_vm2, %v2397_v57, %v533_v30 }
 0x165   : > { %v579_v24 = vmul.f32 0.5, %v578_v15  ;;  %v541_v45 = vmul.f32 %v537_v40, %v2360_v33  ;;  %v602_v46 = vmul.f32 %v1831_v37, %v597_v44 }
 0x166   : > { %v546_v25 = vmul.f32 %v2406_v16, %v539_v18 }
 0x167   : > { %v580_v26 = vsub.f32 1.5, %v579_v24  ;;  %v548_v47 = vmul.f32 %v2406_v16, %v541_v45  ;;  %v607_v48 = vadd.f32 %v1832_v42, %v602_v46 }
 0x168   : > { %v553_v35 = vadd.f32 %v2412_v2, %v546_v25 }
 0x169   : > { %v581_v31 = vmul.f32 %v1846_v8, %v580_v26  ;;  %v555_v49 = vadd.f32 %v2412_v2, %v548_v47 }
 0x16a   : > { %700 = vmatmul.f32.gmra.mxu1 %v553_v35  ;;  %735 = vmatmul.f32.gmra.mxu2 %v553_v35 }
 0x16b   : > { %v585_v34 = vsel %vm584_vm0, %v1846_v8, %v581_v31 }
 0x16c   : > { %v596_v36 = vmul.f32 %v585_v34, %v2371_v39  ;;  %v554_v39 = vadd.f32 %v2412_v2, %v547_v22 }
 0x16e   : > { %v601_v41 = vmul.f32 %v1831_v37, %v596_v36 }
 0x170   : > { %v606_v43 = vadd.f32 %v1832_v42, %v601_v41 }
 0x172   : > { %640 = vmatmul.f32.vlgmr.msra.gmra.mxu0 %v606_v43  ;;  %703 = vmatmul.f32.gmra.mxu1 %v554_v39 }
 0x173   : > { %738 = vmatmul.f32.gmra.mxu2 %v554_v39 }
 0x17a   : > { %643 = vmatmul.f32.gmra.mxu0 %v607_v48  ;;  %706 = vmatmul.f32.gmra.mxu1 %v555_v49 }
 0x17b   : > { %741 = vmatmul.f32.gmra.mxu2 %v555_v49 }
 0x182   : > { %709 = vmatmul.f32.gmra.mxu1 %v606_v43 }
 0x183   : > { %744 = vmatmul.f32.gmra.mxu2 %v606_v43 }
 0x18a   : > { %712 = vmatmul.f32.gmra.mxu1 %v607_v48 }
 0x18b   : > { %747 = vmatmul.f32.gmra.mxu2 %v607_v48 }
 0x1df   : > { %v698_v50 = vpop.f32.mrf.mxu1 }
 0x1e0   : > { %v2475_v63 = vmul.f32 0.4204482, %v698_v50 }
 0x1e5   : > { %v733_v32 = vpop.f32.mrf.mxu2 }
 0x1e7   : > { %v701_v51 = vpop.f32.mrf.mxu1 }
 0x1e8   : > { %v2467_v61 = vmul.f32 0.4204482, %v701_v51 }
 0x1ed   : > { %v736_v33 = vpop.f32.mrf.mxu2 }
 0x1ee   : > { %v2459_v52 = vpack.i.bf16 %v733_v32, %v736_v33 }
 0x1ef   : > { %v704_v53 = vpop.f32.mrf.mxu1  ;;  %v641_v57 = vpop.f32.mrf.mxu0 }
 0x1f0   : > { %v2491_v3 = vmul.f32 0.4204482, %v704_v53  ;;  %v2501_v5 = vmul.f32 0.4204482, %v641_v57 }
 0x1f6   : > { %v739_v54 = vpop.f32.mrf.mxu2 }
 0x1f7   : > { %v707_v55 = vpop.f32.mrf.mxu1  ;;  %v644_v62 = vpop.f32.mrf.mxu0 }
 0x1f8   : > { %v2461_v56 = vmul.f32 0.4204482, %v707_v55  ;;  %v2477_v1 = vmul.f32 0.4204482, %v644_v62 }
 0x1fa   : > { %909 = vrot.lane.b32.xlu2 %v2461_v56, %s2117_s27 }
 0x1fe   : > { %v742_v58 = vpop.f32.mrf.mxu2 }
 0x1ff   : > { %v710_v59 = vpop.f32.mrf.mxu1  ;;  %v2465_v60 = vpack.i.bf16 %v739_v54, %v742_v58 }
 0x200   : > { %v2469_v16 = vmul.f32 0.4204482, %v710_v59 }
 0x202   : > { %905 = vrot.lane.b32.xlu2 %v2467_v61, %s2117_s27  ;;  %911 = vrot.lane.b32.xlu1 %v2469_v16, %s2117_s27 }
 0x206   : > { %v2497_v4 = vpop.f32.mrf.mxu2 }
 0x207   : > { %v713_v0 = vpop.f32.mrf.mxu1 }
 0x208   : > { %v2479_v2 = vmul.f32 0.4204482, %v713_v0 }
 0x20a   : > { %901 = vrot.lane.b32.xlu2 %v2477_v1, %s2117_s27  ;;  %903 = vrot.lane.b32.xlu1 %v2475_v63, %s2117_s27 }
 0x20b   : > { %913 = vrot.lane.b32.xlu0 %v2479_v2, %s2117_s27  ;;  %1636 = vmatpush.xpose.msk.msra.mxu3 %vm773_vm3, %v2479_v2 }
 0x20e   : > { %v748_v6 = vpop.f32.mrf.mxu2 }
 0x20f   : > { %1637 = vmatpush.xpose.msk.msra.mxu3 %vm773_vm3, %v2469_v16  ;;  %v2543_v37 = vpack.i.bf16 %v2497_v4, %v748_v6 }
 0x213   : > { %907 = vrot.lane.b32.xlu0 %v2491_v3, %s2117_s27  ;;  %1638 = vmatpush.xpose.msk.msra.mxu3 %vm773_vm3, %v2461_v56 }
 0x217   : > { %1639 = vmatpush.xpose.msk.msra.mxu3 %vm773_vm3, %v2491_v3 }
 0x21b   : > { %899 = vrot.lane.b32.xlu0 %v2501_v5, %s2117_s27  ;;  %1640 = vmatpush.xpose.msk.msra.mxu3 %vm773_vm3, %v2467_v61 }
 0x21f   : > { %1641 = vmatpush.xpose.msk.msra.mxu3 %vm773_vm3, %v2475_v63 }
 0x222   : > { %1642 = vmatmul.msk.f32.vlgmr.msra.gmra.mxu3 %vm773_vm3, %v2501_v5 }
 0x223   : > { %886 = vmatpush.msrb.mxu3 %v748_v6 }
 0x225   : > { %887 = vmatpush.msrb.mxu3 %v2497_v4 }
 0x227   : > { %888 = vmatpush.msrb.mxu3 %v742_v58 }
 0x229   : > { %889 = vmatpush.msrb.mxu3 %v739_v54 }
 0x22a   : > { %1643 = vmatmul.msk.f32.gmra.mxu3 %vm773_vm3, %v2477_v1 }
 0x22b   : > { %890 = vmatpush.msrb.mxu3 %v736_v33 }
 0x22d   : > { %891 = vmatpush.msrb.mxu3 %v733_v32 }
 0x254   : > { %v910_v23 = vpop.permute.xlu2 %909 }
 0x25c   : > { %v906_v10 = vpop.permute.xlu2 %905 }
 0x264   : > { %v902_v13 = vpop.permute.xlu2 %901 }
 0x274   : > { %v912_v8 = vpop.permute.xlu1 %911 }
 0x27c   : > { %v904_v11 = vpop.permute.xlu1 %903 }
 0x27d   : > { %v914_v7 = vpop.permute.xlu0 %913 }
 0x27e   : > { %1646 = vmatpush.xpose.msk.msrb.mxu0 %vm773_vm3, %v914_v7 }
 0x282   : > { %1647 = vmatpush.xpose.msk.msrb.mxu0 %vm773_vm3, %v912_v8 }
 0x285   : > { %v908_v9 = vpop.permute.xlu0 %907 }
 0x286   : > { %1648 = vmatpush.xpose.msk.msrb.mxu0 %vm773_vm3, %v910_v23 }
 0x28a   : > { %1649 = vmatpush.xpose.msk.msrb.mxu0 %vm773_vm3, %v908_v9 }
 0x28d   : > { %v900_v12 = vpop.permute.xlu0 %899 }
 0x28e   : > { %1650 = vmatpush.xpose.msk.msrb.mxu0 %vm773_vm3, %v906_v10 }
 0x292   : > { %1651 = vmatpush.xpose.msk.msrb.mxu0 %vm773_vm3, %v904_v11 }
 0x295   : > { %1652 = vmatmul.msk.f32.vlgmr.msrb.gmra.mxu0 %vm773_vm3, %v900_v12 }
 0x29d   : > { %1653 = vmatmul.msk.f32.gmra.mxu0 %vm773_vm3, %v902_v13 }
 0x2a5   : > { %v815_v14 = vpop.f32.mrf.mxu3 }
 0x2a6   : > { %v822_v15 = vsel %vm821_vm4, %v815_v14, -inf }
 0x2a7   : > { %823 = vmax.xlane.f32.xlu1 %v822_v15 }
 0x2ad   : > { %v818_v17 = vpop.f32.mrf.mxu3 }
 0x2ae   : > { %v825_v18 = vsel %vm821_vm4, %v818_v17, -inf }
 0x2af   : > { %826 = vmax.xlane.f32.xlu0 %v825_v18 }
 0x312   : > { %v948_v19 = vpop.f32.mrf.mxu0 }
 0x313   : > { %v954_v20 = vsel %vm821_vm4, %v948_v19, -inf }
 0x314   : > { %955 = vmax.xlane.f32.xlu0 %v954_v20 }
 0x31a   : > { %v824_v21 = vpop.xlane.xlu1 %823  ;;  %v951_v30 = vpop.f32.mrf.mxu0 }
 0x31b   : > { %v828_v24 = vsub.f32 %v815_v14, %v824_v21  ;;  %v957_v34 = vsel %vm821_vm4, %v951_v30, -inf }
 0x31d   : > { %v830_v25 = vmul.f32 1.442695, %v828_v24  ;;  %v759_v24 = vld [vmem:[#allocation10 + $0x10] sm:$0xff] }
 0x31f   : > { %1847 = vpow2.f32 %v830_v25  ;;  %v758_v25 = vld [vmem:[#allocation10 + $0x8] sm:$0xff] }
 0x322   : > { %v827_v26 = vpop.xlane.xlu0 %826 }
 0x323   : > { %v829_v35 = vsub.f32 %v818_v17, %v827_v26  ;;  %v757_v26 = vld [vmem:[#allocation10] sm:$0xff] }
 0x325   : > { %v2525_v27 = vpop.eup %1847  ;;  %v832_v28 = vmul.f32 1.442695, %v829_v35 }
 0x326   : > { %v834_v29 = vsel %vm821_vm4, %v2525_v27, 0.0 }
 0x327   : > { %1849 = vpow2.f32 %v832_v28  ;;  %835 = vadd.xlane.f32.xlu2 %v834_v29 }
 0x328   : > { %1795 = vrot.lane.b32.xlu0 %v2459_v52, %s2117_s27 }
 0x32d   : > { %v2531_v31 = vpop.eup %1849 }
 0x32e   : > { %v837_v36 = vsel %vm821_vm4, %v2531_v31, 0.0 }
 0x32f   : > { %958 = vmax.xlane.f32.xlu2 %v957_v34  ;;  %838 = vadd.xlane.f32.xlu1 %v837_v36 }
 0x330   : > { %1127 = vrot.lane.b32.xlu0 %v2479_v2, %s2118_s7 }
 0x338   : > { %1304 = vrot.lane.b32.xlu0 %v2461_v56, %s2119_s16 }
 0x340   : > { %1121 = vrot.lane.b32.xlu0 %v2491_v3, %s2118_s7 }
 0x347   : > { %1785 = vrot.lane.b32.xlu2 %v2543_v37, %s2117_s27 }
 0x348   : > { %1790 = vrot.lane.b32.xlu1 %v2465_v60, %s2117_s27 }
 0x34f   : > { %1308 = vrot.lane.b32.xlu2 %v2479_v2, %s2119_s16 }
 0x350   : > { %1306 = vrot.lane.b32.xlu1 %v2469_v16, %s2119_s16 }
 0x357   : > { %1125 = vrot.lane.b32.xlu2 %v2469_v16, %s2118_s7 }
 0x35f   : > { %1302 = vrot.lane.b32.xlu2 %v2491_v3, %s2119_s16 }
 0x367   : > { %1119 = vrot.lane.b32.xlu2 %v2467_v61, %s2118_s7 }
 0x36f   : > { %1117 = vrot.lane.b32.xlu2 %v2475_v63, %s2118_s7 }
 0x377   : > { %1115 = vrot.lane.b32.xlu2 %v2477_v1, %s2118_s7 }
 0x387   : > { %v956_v22 = vpop.xlane.xlu0 %955 }
 0x388   : > { %v960_v38 = vsub.f32 %v948_v19, %v956_v22 }
 0x38a   : > { %v962_v40 = vmul.f32 1.442695, %v960_v38 }
 0x38c   : > { %1851 = vpow2.f32 %v962_v40 }
 0x392   : > { %v2563_v41 = vpop.eup %1851 }
 0x393   : > { %v966_v42 = vsel %vm821_vm4, %v2563_v41, 0.0 }
 0x394   : > { %967 = vadd.xlane.f32.xlu1 %v966_v42 }
 0x39a   : > { %v836_v43 = vpop.xlane.xlu2 %835  ;;  %v2567_v39 = vpop.permute.xlu0 %1795 }
 0x39b   : > { %1853 = vrcp.f32 %v836_v43  ;;  %v851_v32 = vand.u32 2147483648, %v836_v43  ;;  %v849_v53 = vand.u32 2147483647, %v836_v43  ;;  %vm845_vm6 = vweird.f32 %v836_v43 }
 0x39c   : > { %v1797_v20 = vunpack.i.l.bf16 %v2567_v39  ;;  %v1798_v21 = vunpack.i.h.bf16 %v2567_v39 }
 0x39d   : > { %v852_v57 = vor.u32 1.1754944e-38, %v851_v32  ;;  %vm850_vm8 = vcmp.eq.f32.partialorder %v849_v53, 8.507059e+37 }
 0x3a1   : > { %v1854_v44 = vpop.eup %1853 }
 0x3a2   : > { %v841_v45 = vmul.f32 %v1854_v44, %v836_v43  ;;  %v959_v46 = vpop.xlane.xlu2 %958  ;;  %v839_v47 = vpop.xlane.xlu1 %838  ;;  %vm846_vm5 = vweird.f32 %v1854_v44 }
 0x3a3   : > { %v961_v48 = vsub.f32 %v951_v30, %v959_v46  ;;  %1855 = vrcp.f32 %v839_v47  ;;  %v1128_v49 = vpop.permute.xlu0 %1127  ;;  %vm847_vm7 = vmor %vm845_vm6, %vm846_vm5  ;;  %v865_v6 = vand.u32 2147483648, %v839_v47  ;;  %v863_v9 = vand.u32 2147483647, %v839_v47 }
 0x3a4   : > { %v842_v50 = vsub.f32 1.0, %v841_v45  ;;  %1660 = vmatpush.xpose.msk.msrb.mxu1 %vm773_vm3, %v1128_v49  ;;  %vm859_vm10 = vweird.f32 %v839_v47 }
 0x3a5   : > { %v964_v51 = vmul.f32 1.442695, %v961_v48  ;;  %v866_v11 = vor.u32 1.1754944e-38, %v865_v6  ;;  %vm864_vm12 = vcmp.eq.f32.partialorder %v863_v9, 8.507059e+37 }
 0x3a6   : > { %v843_v33 = vmul.f32 %v1854_v44, %v842_v50 }
 0x3a7   : > { %1857 = vpow2.f32 %v964_v51 }
 0x3a8   : > { %v844_v54 = vadd.f32 %v1854_v44, %v843_v33 }
 0x3a9   : > { %v1856_v55 = vpop.eup %1855 }
 0x3aa   : > { %v855_v58 = vmul.f32 %v1856_v55, %v839_v47  ;;  %v1786_v59 = vpop.permute.xlu2 %1785  ;;  %v848_v16 = vsel %vm847_vm7, %v1854_v44, %v844_v54  ;;  %vm860_vm9 = vweird.f32 %v1856_v55 }
 0x3ab   : > { %v1787_v62 = vunpack.i.l.bf16 %v1786_v59  ;;  %v853_v0 = vsel %vm850_vm8, %v852_v57, %v848_v16  ;;  %v1788_v7 = vunpack.i.h.bf16 %v1786_v59  ;;  %vm861_vm11 = vmor %vm859_vm10, %vm860_vm9  ;;  %v1305_v29 = vpop.permute.xlu0 %1304  ;;  %v764_v59 = vld [vmem:[#allocation10 + $0x38] sm:$0xff]  ;;  %v763_v16 = vld [vmem:[#allocation10 + $0x30] sm:$0xff] }
 0x3ac   : > { %v856_v2 = vsub.f32 1.0, %v855_v58  ;;  %v868_v3 = vmul.f32 %v2525_v27, %v853_v0  ;;  %1073 = vmatpush.msra.mxu0 %v764_v59 }
 0x3ad   : > { %v2571_v4 = vpop.eup %1857  ;;  %1042 = vmatpush.msra.mxu3 %v1787_v62  ;;  %1123 = vrot.lane.b32.xlu1 %v2461_v56, %s2118_s7  ;;  %v762_v62 = vld [vmem:[#allocation10 + $0x28] sm:$0xff] }
 0x3ae   : > { %v857_v8 = vmul.f32 %v1856_v55, %v856_v2  ;;  %1644 = vmatmul.msk.f32.vlgmr.msrb.gmra.mxu3 %vm821_vm4, %v868_v3  ;;  %v969_v23 = vsel %vm821_vm4, %v2571_v4, 0.0  ;;  %1074 = vmatpush.msra.mxu0 %v763_v16 }
 0x3af   : > { %1043 = vmatpush.msra.mxu3 %v1788_v7  ;;  %970 = vadd.xlane.f32.xlu0 %v969_v23 }
 0x3b0   : > { %v858_v10 = vadd.f32 %v1856_v55, %v857_v8  ;;  %1075 = vmatpush.msra.mxu0 %v762_v62  ;;  %v761_v8 = vld [vmem:[#allocation10 + $0x20] sm:$0xff] }
 0x3b2   : > { %v1309_v12 = vpop.permute.xlu2 %1308  ;;  %v862_v13 = vsel %vm861_vm11, %v1856_v55, %v858_v10  ;;  %1076 = vmatpush.msra.mxu0 %v761_v8 }
 0x3b3   : > { %v867_v14 = vsel %vm864_vm12, %v866_v11, %v862_v13  ;;  %v1122_v43 = vpop.permute.xlu0 %1121 }
 0x3b4   : > { %v869_v56 = vmul.f32 %v2531_v31, %v867_v14 }
 0x3b5   : > { %1300 = vrot.lane.b32.xlu1 %v2467_v61, %s2119_s16  ;;  %v760_v61 = vld [vmem:[#allocation10 + $0x18] sm:$0xff] }
 0x3b6   : > { %1645 = vmatmul.msk.f32.gmra.mxu3 %vm821_vm4, %v869_v56 }
 0x3ba   : > { %v1126_v15 = vpop.permute.xlu2 %1125  ;;  %v1791_v17 = vpop.permute.xlu1 %1790 }
 0x3bb   : > { %v1792_v18 = vunpack.i.l.bf16 %v1791_v17  ;;  %1661 = vmatpush.xpose.msk.msrb.mxu1 %vm773_vm3, %v1126_v15  ;;  %v1793_v19 = vunpack.i.h.bf16 %v1791_v17 }
 0x3bd   : > { %1044 = vmatpush.msra.mxu3 %v1792_v18  ;;  %1294 = vrot.lane.b32.xlu1 %v2501_v5, %s2119_s16 }
 0x3bf   : > { %1045 = vmatpush.msra.mxu3 %v1793_v19 }
 0x3c1   : > { %1046 = vmatpush.msra.mxu3 %v1797_v20 }
 0x3c2   : > { %v1307_v35 = vpop.permute.xlu1 %1306  ;;  %v1303_v22 = vpop.permute.xlu2 %1302 }
 0x3c3   : > { %1298 = vrot.lane.b32.xlu0 %v2475_v63, %s2119_s16  ;;  %1047 = vmatpush.msra.mxu3 %v1798_v21 }
 0x3c5   : > { %1296 = vrot.lane.b32.xlu1 %v2477_v1, %s2119_s16  ;;  %1102 = vmatpush.msrb.mxu3 %v760_v61 }
 0x3c7   : > { %1103 = vmatpush.msrb.mxu3 %v759_v24 }
 0x3c9   : > { %1104 = vmatpush.msrb.mxu3 %v758_v25 }
 0x3ca   : > { %v1120_v44 = vpop.permute.xlu2 %1119 }
 0x3cb   : > { %1113 = vrot.lane.b32.xlu0 %v2501_v5, %s2118_s7  ;;  %1105 = vmatpush.msrb.mxu3 %v757_v26 }
 0x3d2   : > { %v1118_v47 = vpop.permute.xlu2 %1117 }
 0x3da   : > { %v1116_v3 = vpop.permute.xlu2 %1115 }
 0x407   : > { %v968_v27 = vpop.xlane.xlu1 %967 }
 0x408   : > { %1859 = vrcp.f32 %v968_v27  ;;  %v983_v31 = vand.u32 2147483648, %v968_v27  ;;  %v981_v34 = vand.u32 2147483647, %v968_v27  ;;  %vm977_vm14 = vweird.f32 %v968_v27 }
 0x40a   : > { %v984_v36 = vor.u32 1.1754944e-38, %v983_v31  ;;  %vm982_vm0 = vcmp.eq.f32.partialorder %v981_v34, 8.507059e+37 }
 0x40e   : > { %v1860_v28 = vpop.eup %1859 }
 0x40f   : > { %v973_v63 = vmul.f32 %v1860_v28, %v968_v27  ;;  %vm978_vm13 = vweird.f32 %v1860_v28 }
 0x410   : > { %vm979_vm15 = vmor %vm977_vm14, %vm978_vm13 }
 0x411   : > { %v974_v30 = vsub.f32 1.0, %v973_v63 }
 0x413   : > { %v975_v1 = vmul.f32 %v1860_v28, %v974_v30 }
 0x415   : > { %v976_v5 = vadd.f32 %v1860_v28, %v975_v1 }
 0x417   : > { %v980_v38 = vsel %vm979_vm15, %v1860_v28, %v976_v5 }
 0x418   : > { %v985_v40 = vsel %vm982_vm0, %v984_v36, %v980_v38 }
 0x419   : > { %v1000_v42 = vmul.f32 %v2563_v41, %v985_v40 }
 0x41b   : > { %1654 = vmatmul.msk.f32.vlgmr.msra.gmra.mxu3 %vm821_vm4, %v1000_v42 }
 0x41c   : > { %1672 = vmatpush.xpose.msk.msra.mxu3 %vm773_vm3, %v1309_v12 }
 0x41f   : > { %v1124_v39 = vpop.permute.xlu1 %1123 }
 0x420   : > { %1673 = vmatpush.xpose.msk.msra.mxu3 %vm773_vm3, %v1307_v35  ;;  %1662 = vmatpush.xpose.msk.msrb.mxu1 %vm773_vm3, %v1124_v39 }
 0x422   : > { %v971_v45 = vpop.xlane.xlu0 %970 }
 0x423   : > { %1861 = vrcp.f32 %v971_v45  ;;  %v997_v50 = vand.u32 2147483648, %v971_v45  ;;  %v995_v51 = vand.u32 2147483647, %v971_v45  ;;  %vm991_vm2 = vweird.f32 %v971_v45 }
 0x424   : > { %1674 = vmatpush.xpose.msk.msra.mxu3 %vm773_vm3, %v1305_v29  ;;  %1663 = vmatpush.xpose.msk.msrb.mxu1 %vm773_vm3, %v1122_v43 }
 0x425   : > { %v998_v53 = vor.u32 1.1754944e-38, %v997_v50  ;;  %vm996_vm6 = vcmp.eq.f32.partialorder %v995_v51, 8.507059e+37 }
 0x427   : > { %v1301_v48 = vpop.permute.xlu1 %1300 }
 0x428   : > { %1675 = vmatpush.xpose.msk.msra.mxu3 %vm773_vm3, %v1303_v22  ;;  %1664 = vmatpush.xpose.msk.msrb.mxu1 %vm773_vm3, %v1120_v44 }
 0x429   : > { %v1862_v41 = vpop.eup %1861 }
 0x42a   : > { %v987_v46 = vmul.f32 %v1862_v41, %v971_v45  ;;  %vm992_vm1 = vweird.f32 %v1862_v41 }
 0x42b   : > { %vm993_vm5 = vmor %vm991_vm2, %vm992_vm1 }
 0x42c   : > { %v988_v49 = vsub.f32 1.0, %v987_v46  ;;  %1676 = vmatpush.xpose.msk.msra.mxu3 %vm773_vm3, %v1301_v48  ;;  %1665 = vmatpush.xpose.msk.msrb.mxu1 %vm773_vm3, %v1118_v47 }
 0x42e   : > { %v989_v32 = vmul.f32 %v1862_v41, %v988_v49 }
 0x430   : > { %v990_v33 = vadd.f32 %v1862_v41, %v989_v32 }
 0x431   : > { %v893_v0 = vpop.f32.mrf.mxu3 }
 0x432   : > { %v994_v54 = vsel %vm993_vm5, %v1862_v41, %v990_v33 }
 0x433   : > { %v999_v55 = vsel %vm996_vm6, %v998_v53, %v994_v54 }
 0x434   : > { %v1001_v57 = vmul.f32 %v2571_v4, %v999_v55  ;;  %v1295_v4 = vpop.permute.xlu1 %1294 }
 0x435   : > { %v1299_v58 = vpop.permute.xlu0 %1298 }
 0x436   : > { %1655 = vmatmul.msk.f32.gmra.mxu3 %vm821_vm4, %v1001_v57 }
 0x437   : > { %1677 = vmatpush.xpose.msk.msra.mxu3 %vm773_vm3, %v1299_v58 }
 0x439   : > { %v896_v6 = vpop.f32.mrf.mxu3 }
 0x43c   : > { %v1297_v7 = vpop.permute.xlu1 %1296 }
 0x43d   : > { %v1114_v2 = vpop.permute.xlu0 %1113 }
 0x43e   : > { %1658 = vmatmul.msk.f32.vlgmr.msrb.gmra.mxu3 %vm773_vm3, %v893_v0  ;;  %1666 = vmatmul.msk.f32.vlgmr.msrb.gmra.mxu1 %vm773_vm3, %v1114_v2 }
 0x446   : > { %1659 = vmatmul.msk.f32.gmra.mxu3 %vm773_vm3, %v896_v6  ;;  %1667 = vmatmul.msk.f32.gmra.mxu1 %vm773_vm3, %v1116_v3 }
 0x44e   : > { %1678 = vmatmul.msk.f32.vlgmr.msra.gmra.mxu3 %vm773_vm3, %v1295_v4 }
 0x456   : > { %1679 = vmatmul.msk.f32.gmra.mxu3 %vm773_vm3, %v1297_v7 }
 0x49e   : > { %v1049_v23 = vpop.f32.mrf.mxu3 }
 0x49f   : > { %1656 = vmatmul.msk.f32.vlgmr.msra.gmra.mxu0 %vm773_vm3, %v1049_v23 }
 0x4b9   : > { %v1052_v9 = vpop.f32.mrf.mxu3 }
 0x4ba   : > { %1657 = vmatmul.msk.f32.gmra.mxu0 %vm773_vm3, %v1052_v9 }
 0x4bb   : > { %v1162_v10 = vpop.f32.mrf.mxu1 }
 0x4bc   : > { %v1168_v11 = vsel %vm821_vm4, %v1162_v10, -inf }
 0x4bd   : > { %1169 = vmax.xlane.f32.xlu0 %v1168_v11 }
 0x4c1   : > { %v2616_v12 = vpop.f32.mrf.mxu3 }
 0x4c3   : > { %v1165_v13 = vpop.f32.mrf.mxu1 }
 0x4c4   : > { %v1171_v14 = vsel %vm821_vm4, %v1165_v13, -inf }
 0x4c5   : > { %1172 = vmax.xlane.f32.xlu2 %v1171_v14 }
 0x4c9   : > { %v2619_v56 = vpop.f32.mrf.mxu3 }
 0x4d1   : > { %v1343_v15 = vpop.f32.mrf.mxu3 }
 0x4d2   : > { %v1349_v17 = vsel %vm821_vm4, %v1343_v15, -inf }
 0x4d3   : > { %1350 = vmax.xlane.f32.xlu1 %v1349_v17 }
 0x4d9   : > { %v1346_v18 = vpop.f32.mrf.mxu3 }
 0x4da   : > { %v1352_v19 = vsel %vm821_vm4, %v1346_v18, -inf }
 0x4db   : > { %1353 = vmax.xlane.f32.xlu0 %v1352_v19 }
 0x530   : > { %v1170_v20 = vpop.xlane.xlu0 %1169 }
 0x531   : > { %v1174_v21 = vsub.f32 %v1162_v10, %v1170_v20 }
 0x533   : > { %v1176_v61 = vmul.f32 1.442695, %v1174_v21 }
 0x535   : > { %1863 = vpow2.f32 %v1176_v61 }
 0x538   : > { %v1173_v24 = vpop.xlane.xlu2 %1172 }
 0x539   : > { %v1175_v25 = vsub.f32 %v1165_v13, %v1173_v24 }
 0x53b   : > { %v2623_v26 = vpop.eup %1863  ;;  %v1178_v35 = vmul.f32 1.442695, %v1175_v25 }
 0x53c   : > { %v1180_v27 = vsel %vm821_vm4, %v2623_v26, 0.0 }
 0x53d   : > { %1865 = vpow2.f32 %v1178_v35  ;;  %1181 = vadd.xlane.f32.xlu1 %v1180_v27 }
 0x543   : > { %v2627_v28 = vpop.eup %1865 }
 0x544   : > { %v1183_v63 = vsel %vm821_vm4, %v2627_v28, 0.0 }
 0x545   : > { %1184 = vadd.xlane.f32.xlu0 %v1183_v63 }
 0x546   : > { %v1351_v29 = vpop.xlane.xlu1 %1350 }
 0x547   : > { %v1355_v30 = vsub.f32 %v1343_v15, %v1351_v29 }
 0x549   : > { %v1357_v31 = vmul.f32 1.442695, %v1355_v30 }
 0x54b   : > { %1867 = vpow2.f32 %v1357_v31 }
 0x54e   : > { %v1354_v1 = vpop.xlane.xlu0 %1353 }
 0x54f   : > { %v1356_v34 = vsub.f32 %v1346_v18, %v1354_v1 }
 0x551   : > { %v2631_v5 = vpop.eup %1867  ;;  %v1359_v36 = vmul.f32 1.442695, %v1356_v34 }
 0x552   : > { %v1361_v22 = vsel %vm821_vm4, %v2631_v5, 0.0 }
 0x553   : > { %1869 = vpow2.f32 %v1359_v36  ;;  %1362 = vadd.xlane.f32.xlu2 %v1361_v22 }
 0x556   : > { %1800 = vrot.lane.b32.xlu1 %v2543_v37, %s2118_s7 }
 0x559   : > { %v2637_v38 = vpop.eup %1869  ;;  %1805 = vrot.lane.b32.xlu0 %v2543_v37, %s2119_s16 }
 0x55a   : > { %v1364_v40 = vsel %vm821_vm4, %v2637_v38, 0.0 }
 0x55b   : > { %1365 = vadd.xlane.f32.xlu2 %v1364_v40 }
 0x55e   : > { %1815 = vrot.lane.b32.xlu1 %v2465_v60, %s2119_s16 }
 0x561   : > { %1820 = vrot.lane.b32.xlu0 %v2459_v52, %s2118_s7 }
 0x566   : > { %1825 = vrot.lane.b32.xlu1 %v2459_v52, %s2119_s16 }
 0x573   : > { %1810 = vrot.lane.b32.xlu2 %v2465_v60, %s2118_s7 }
 0x5b0   : > { %v1182_v42 = vpop.xlane.xlu1 %1181 }
 0x5b1   : > { %1871 = vrcp.f32 %v1182_v42  ;;  %v1197_v2 = vand.u32 2147483648, %v1182_v42  ;;  %vm1191_vm10 = vweird.f32 %v1182_v42  ;;  %v1195_v7 = vand.u32 2147483647, %v1182_v42 }
 0x5b3   : > { %v1198_v18 = vor.u32 1.1754944e-38, %v1197_v2  ;;  %vm1196_vm14 = vcmp.eq.f32.partialorder %v1195_v7, 8.507059e+37 }
 0x5b7   : > { %v2653_v37 = vpop.eup %1871 }
 0x5b8   : > { %v2651_v43 = vpop.xlane.xlu0 %1184  ;;  %v1187_v44 = vmul.f32 %v2653_v37, %v1182_v42  ;;  %vm1192_vm7 = vweird.f32 %v2653_v37 }
 0x5b9   : > { %1873 = vrcp.f32 %v2651_v43  ;;  %vm2673_vm12 = vmor %vm1191_vm10, %vm1192_vm7  ;;  %v1211_v22 = vand.u32 2147483648, %v2651_v43  ;;  %vm1205_vm5 = vweird.f32 %v2651_v43 }
 0x5ba   : > { %v1188_v46 = vsub.f32 1.0, %v1187_v44  ;;  %v772_v44 = vld [vmem:[#allocation10 + $0x78] sm:$0xff] }
 0x5bc   : > { %v1189_v33 = vmul.f32 %v2653_v37, %v1188_v46  ;;  %v771_v46 = vld [vmem:[#allocation10 + $0x70] sm:$0xff] }
 0x5be   : > { %v1190_v59 = vadd.f32 %v2653_v37, %v1189_v33  ;;  %v765_v33 = vld [vmem:[#allocation10 + $0x40] sm:$0xff] }
 0x5bf   : > { %v2657_v48 = vpop.eup %1873 }
 0x5c0   : > { %v1201_v53 = vmul.f32 %v2657_v48, %v2651_v43  ;;  %v1194_v17 = vsel %vm2673_vm12, %v2653_v37, %v1190_v59  ;;  %vm1206_vm0 = vweird.f32 %v2657_v48 }
 0x5c1   : > { %v1199_v27 = vsel %vm1196_vm14, %v1198_v18, %v1194_v17  ;;  %vm1207_vm6 = vmor %vm1205_vm5, %vm1206_vm0 }
 0x5c2   : > { %v1202_v16 = vsub.f32 1.0, %v1201_v53  ;;  %v1214_v37 = vmul.f32 %v2623_v26, %v1199_v27  ;;  %v770_v26 = vld [vmem:[#allocation10 + $0x68] sm:$0xff] }
 0x5c4   : > { %v1203_v13 = vmul.f32 %v2657_v48, %v1202_v16 }
 0x5c6   : > { %v1363_v39 = vpop.xlane.xlu2 %1362  ;;  %v1204_v31 = vadd.f32 %v2657_v48, %v1203_v13 }
 0x5c7   : > { %1875 = vrcp.f32 %v1363_v39  ;;  %v1378_v62 = vand.u32 2147483648, %v1363_v39  ;;  %vm1372_vm9 = vweird.f32 %v1363_v39  ;;  %v1376_v6 = vand.u32 2147483647, %v1363_v39 }
 0x5c8   : > { %v1801_v45 = vpop.permute.xlu1 %1800 }
 0x5c9   : > { %v1802_v41 = vunpack.i.l.bf16 %v1801_v45  ;;  %v1803_v47 = vunpack.i.h.bf16 %v1801_v45  ;;  %v1379_v14 = vor.u32 1.1754944e-38, %v1378_v62  ;;  %vm1377_vm13 = vcmp.eq.f32.partialorder %v1376_v6, 8.507059e+37 }
 0x5cb   : > { %1250 = vmatpush.msrb.mxu2 %v1802_v41  ;;  %v1806_v52 = vpop.permute.xlu0 %1805  ;;  %v1208_v41 = vsel %vm1207_vm6, %v2657_v48, %v1204_v31  ;;  %v768_v48 = vld [vmem:[#allocation10 + $0x58] sm:$0xff] }
 0x5cc   : > { %v1807_v60 = vunpack.i.l.bf16 %v1806_v52  ;;  %v1808_v32 = vunpack.i.h.bf16 %v1806_v52  ;;  %v1212_v52 = vor.u32 1.1754944e-38, %v1211_v22  ;;  %1281 = vmatpush.msrb.mxu0 %v768_v48 }
 0x5cd   : > { %v1876_v49 = vpop.eup %1875  ;;  %1251 = vmatpush.msrb.mxu2 %v1803_v47 }
 0x5ce   : > { %v1368_v50 = vmul.f32 %v1876_v49, %v1363_v39  ;;  %v2659_v51 = vpop.xlane.xlu2 %1365  ;;  %1431 = vmatpush.msra.mxu1 %v1807_v60  ;;  %vm1373_vm8 = vweird.f32 %v1876_v49  ;;  %v1209_v39 = vand.u32 2147483647, %v2651_v43 }
 0x5cf   : > { %1877 = vrcp.f32 %v2659_v51  ;;  %vm2667_vm11 = vmor %vm1372_vm9, %vm1373_vm8  ;;  %v1392_v63 = vand.u32 2147483648, %v2659_v51  ;;  %vm1386_vm1 = vweird.f32 %v2659_v51  ;;  %v1390_v36 = vand.u32 2147483647, %v2659_v51 }
 0x5d0   : > { %v1369_v54 = vsub.f32 1.0, %v1368_v50  ;;  %v1816_v55 = vpop.permute.xlu1 %1815  ;;  %1432 = vmatpush.msra.mxu1 %v1808_v32  ;;  %vm1210_vm8 = vcmp.eq.f32.partialorder %v1209_v39, 8.507059e+37  ;;  %v769_v50 = vld [vmem:[#allocation10 + $0x60] sm:$0xff]  ;;  %v767_v32 = vld [vmem:[#allocation10 + $0x50] sm:$0xff] }
 0x5d1   : > { %v1817_v57 = vunpack.i.l.bf16 %v1816_v55  ;;  %v1818_v0 = vunpack.i.h.bf16 %v1816_v55  ;;  %v1393_v45 = vor.u32 1.1754944e-38, %v1392_v63  ;;  %vm1391_vm7 = vcmp.eq.f32.partialorder %v1390_v36, 8.507059e+37  ;;  %1282 = vmatpush.msrb.mxu0 %v767_v32  ;;  %v1078_v55 = vpop.f32.mrf.mxu0 }
 0x5d2   : > { %v1370_v58 = vmul.f32 %v1876_v49, %v1369_v54  ;;  %v1213_v60 = vsel %vm1210_vm8, %v1212_v52, %v1208_v41 }
 0x5d3   : > { %1433 = vmatpush.msra.mxu1 %v1817_v57  ;;  %v1821_v20 = vpop.permute.xlu0 %1820 }
 0x5d4   : > { %v1371_v3 = vadd.f32 %v1876_v49, %v1370_v58  ;;  %v1822_v29 = vunpack.i.l.bf16 %v1821_v20  ;;  %v1823_v40 = vunpack.i.h.bf16 %v1821_v20  ;;  %v1108_v58 = vadd.f32 %v2616_v12, %v1078_v55 }
 0x5d5   : > { %v1878_v4 = vpop.eup %1877  ;;  %1434 = vmatpush.msra.mxu1 %v1818_v0 }
 0x5d6   : > { %v1375_v9 = vsel %vm2667_vm11, %v1876_v49, %v1371_v3  ;;  %v1382_v10 = vmul.f32 %v1878_v4, %v2659_v51  ;;  %v1811_v11 = vpop.permute.xlu2 %1810  ;;  %vm1387_vm15 = vweird.f32 %v1878_v4  ;;  %v1215_v49 = vmul.f32 %v2627_v28, %v1213_v60  ;;  %v766_v51 = vld [vmem:[#allocation10 + $0x48] sm:$0xff] }
 0x5d7   : > { %v1812_v15 = vunpack.i.l.bf16 %v1811_v11  ;;  %v1380_v61 = vsel %vm1377_vm13, %v1379_v14, %v1375_v9  ;;  %v1813_v24 = vunpack.i.h.bf16 %v1811_v11  ;;  %vm2692_vm2 = vmor %vm1386_vm1, %vm1387_vm15  ;;  %1283 = vmatpush.msrb.mxu0 %v766_v51 }
 0x5d8   : > { %v1383_v19 = vsub.f32 1.0, %v1382_v10  ;;  %v1826_v21 = vpop.permute.xlu1 %1825  ;;  %v1395_v1 = vmul.f32 %v2631_v5, %v1380_v61 }
 0x5d9   : > { %v1827_v25 = vunpack.i.l.bf16 %v1826_v21  ;;  %1252 = vmatpush.msrb.mxu2 %v1812_v15  ;;  %v1828_v30 = vunpack.i.h.bf16 %v1826_v21  ;;  %1284 = vmatpush.msrb.mxu0 %v765_v33  ;;  %v1081_v57 = vpop.f32.mrf.mxu0 }
 0x5da   : > { %v1384_v35 = vmul.f32 %v1878_v4, %v1383_v19  ;;  %v1111_v2 = vadd.f32 %v2619_v56, %v1081_v57 }
 0x5db   : > { %1253 = vmatpush.msrb.mxu2 %v1813_v24  ;;  %1435 = vmatpush.msra.mxu1 %v1827_v25 }
 0x5dc   : > { %v1385_v34 = vadd.f32 %v1878_v4, %v1384_v35 }
 0x5dd   : > { %1254 = vmatpush.msrb.mxu2 %v1822_v29  ;;  %1436 = vmatpush.msra.mxu1 %v1828_v30 }
 0x5de   : > { %1680 = vmatmul.msk.f32.vlgmr.msra.gmra.mxu1 %vm821_vm4, %v1395_v1  ;;  %v1389_v5 = vsel %vm2692_vm2, %v1878_v4, %v1385_v34 }
 0x5df   : > { %1255 = vmatpush.msrb.mxu2 %v1823_v40  ;;  %v1394_v47 = vsel %vm1391_vm7, %v1393_v45, %v1389_v5 }
 0x5e0   : > { %1668 = vmatmul.msk.f32.vlgmr.msrb.gmra.mxu2 %vm821_vm4, %v1214_v37  ;;  %v1396_v43 = vmul.f32 %v2637_v38, %v1394_v47 }
 0x5e1   : > { %1462 = vmatpush.msra.mxu2 %v772_v44 }
 0x5e3   : > { %1463 = vmatpush.msra.mxu2 %v771_v46 }
 0x5e5   : > { %1464 = vmatpush.msra.mxu2 %v770_v26 }
 0x5e6   : > { %1681 = vmatmul.msk.f32.gmra.mxu1 %vm821_vm4, %v1396_v43 }
 0x5e7   : > { %1465 = vmatpush.msra.mxu2 %v769_v50 }
 0x5e8   : > { %1669 = vmatmul.msk.f32.gmra.mxu2 %vm821_vm4, %v1215_v49 }
 0x65b   : > { %v1438_v53 = vpop.f32.mrf.mxu1 }
 0x65c   : > { %1682 = vmatmul.msk.f32.vlgmr.msra.gmra.mxu2 %vm773_vm3, %v1438_v53 }
 0x663   : > { %v1257_v38 = vpop.f32.mrf.mxu2  ;;  %v1441_v54 = vpop.f32.mrf.mxu1 }
 0x664   : > { %1670 = vmatmul.msk.f32.vlgmr.msrb.gmra.mxu0 %vm773_vm3, %v1257_v38  ;;  %1683 = vmatmul.msk.f32.gmra.mxu2 %vm773_vm3, %v1441_v54 }
 0x66b   : > { %v1260_v28 = vpop.f32.mrf.mxu2 }
 0x66c   : > { %1671 = vmatmul.msk.f32.gmra.mxu0 %vm773_vm3, %v1260_v28 }
 0x6df   : > { %v1467_v59 = vpop.f32.mrf.mxu2 }
 0x6e1   : > { %v1286_v16 = vpop.f32.mrf.mxu0 }
 0x6e2   : > { %v1292_v62 = vadd.f32 %v1286_v16, %v1108_v58 }
 0x6e4   : > { %v1473_v0 = vadd.f32 %v1467_v59, %v1292_v62 }
 0x6e6   : > { %1475 = vst [vmem:[%s443_s20] sm:$0xff] %v1473_v0 }
 0x6e7   : > { %v1470_v6 = vpop.f32.mrf.mxu2 }
 0x6e9   : > { %v1289_v3 = vpop.f32.mrf.mxu0 }
 0x6ea   : > { %v1293_v12 = vadd.f32 %v1289_v3, %v1111_v2 }
 0x6ec   : > { %v1474_v4 = vadd.f32 %v1470_v6, %v1293_v12 }
 0x6ee   : > { %1476 = vst [vmem:[%s443_s20 + $0x8] sm:$0xff] %v1474_v4 }
 0x6ef   : > { %2056 = shalt.err (!%p2053_p9)
}
 0x6f0   : > { %s2120_s6 = smov 128   ;;  %s2121_s22 = smov 8  }
 0x6f1   : > { %1708 = dma.vmem_to_hbm [thread:$0]  (%p2261_p7), %s1491_s18, 256, %s1493_s14, %s1478_s13, %s2120_s6, %s2120_s6, %s2121_s22  }
 0x6f2 PF: > { %s2799_s8 = sld [smem:[#allocation17_spill]]  ;;  %p2801_p12 = scmp.ge.s32.totalorder %s2107_s12, 2 }
 0x6f4   : > { %p1728_p13 = pnand %p2801_p12, %p2207_p6 }
 0x6f6   : > { %p1729_p0 = pneg %p1728_p13 }
 0x6f8   : > { %s1507_s7 = sand.u32 1, %s2799_s8  }
 0x6f9   : > { %s1508_s16 = scalar_lea.sflag [#allocation4], %s1507_s7 }
 0x6fa   : > { %2090 = dma.done.wait (%p1729_p0), %s1508_s16, 256  }
 0x6fb   : > { %2092 = vsyncadd (%p1729_p0), %s1508_s16, 4294967040  ;;  %s2802_s12 = sld [smem:[#allocation20_spill]]  ;;  %s2805_s30 = smov %s2099_s10 }
 0x6fc   : > { %s2803_s26 = sld [smem:[#allocation18_spill]] }
 0x6fd   : > { %s2804_s11 = sld [smem:[#allocation21_spill]] }
 0x701   : > { %p26_p3 = scmp.ge.s32.totalorder %s2802_s12, 4  }
 0x702   : > { %s2806_s10 = smov %s2803_s26 }
 0x703   :  { %28 = sbr.rel (!%p26_p3) target bundleno = 12 (0xc), region = 126 }
 0x708   :  { %1514 = vsyncpa [#allocation3], 1 }
 0x709   :  { %1516 = vsyncpa [#allocation3 + $0x1], 1 }
 0x70a   :  { %1517 = vsyncpa [#allocation6], 1 }
 0x70b   :  { %1519 = vsyncpa [#allocation6 + $0x1], 1 }
 0x70c   :  { %1520 = vsyncpa [#allocation9], 1 }
 0x70d   :  { %1521 = vsyncpa [#allocation4], 1 }
 0x70e   :  { %1523 = vsyncpa [#allocation4 + $0x1], 1 }

</bundles_post_ra>
